<compile_context>
chip_gen: v7x
topology: tpu7x:2x2x1
jax: 0.10.0
libtpu: 0.0.40
codegen_flags: <defaults>
</compile_context>

<pallas_src>
import jax
import jax.numpy as jnp
from jax import lax
from jax.experimental import pallas as pl
from jax.experimental.pallas import tpu as pltpu
from math import sqrt

SEQ, BATCH = 8, 2
VOCAB, EMBED, HID, OUT = 32, 16, 32, 4
PAD_IDX = 0

BATCH_PAD = 8                 # pad batch to a full sublane tile
TBP = SEQ * BATCH_PAD         # rows per full pass (time-major, batch-minor)
G8 = 8 * HID                  # fused gate width: 4 gates x 2 directions
KTAB = 128                    # padded contraction dim of the fused gate table
OUT_PAD = 128                 # lane-dense output width


def bilstm_kernel(ids_ref, tab_ref, whh_ref, fc_ref, out_ref, gx_s, hob_s):
    """Fused embedding+proj table matmul -> bi-LSTM recurrence -> Linear, all VMEM resident.

    ids_ref : (T*Bp, 2) int32   col 0 = token at time t, col 1 = token at time T-1-t
    tab_ref : (128, 8H) f32     rows 0..V-1: emb@W_ih (fwd cols only); row V: fwd bias;
                                rows V+1..2V: emb@W_ih (bwd cols only); row 2V+1: bwd bias;
                                rest zero.  Column layout [i_f,i_b,f_f,f_b,o_f,o_b,g_f,g_b].
    whh_ref : (2H, 8H) bf16     hidden->gates, block-diagonal over direction, same layout
    fc_ref  : (2H+1, 128) f32   rows 0..2H-1 = W_fc^T (lane-padded), row 2H = b_fc
    out_ref : (T*Bp, 128) f32   lane-dense output; real data in [:, :OUT]
    gx_s    : (T*Bp, 8H) f32    scratch: per-step gate inputs, already time-swizzled
    hob_s   : (T*Bp, 2H) f32    scratch: [fwd_h(t) | bwd_h(t)] per output row
    """
    T, BP, H, V = SEQ, BATCH_PAD, HID, VOCAB

    # ---- prologue: embedding + input projection + bias + fwd/bwd time swizzle,
    #      all as ONE one-hot matmul against the precomputed table.
    ids = ids_ref[...]                                               # (TBP, 2) int32
    idf = ids[:, 0:1]                                                # token at time t
    idb = ids[:, 1:2]                                                # token at time T-1-t
    j = lax.broadcasted_iota(jnp.int32, (TBP, KTAB), 1)
    onehot = ((j == idf) | (j == V) | (j == idb + (V + 1)) | (j == 2 * V + 1))
    gx_s[...] = jnp.dot(onehot.astype(jnp.float32), tab_ref[...],
                        preferred_element_type=jnp.float32)          # (TBP, 8H)

    whh = whh_ref[...]                                               # (2H, 8H) bf16

    # ---- fused forward + backward recurrence, fully unrolled (T static) ----
    h = jnp.zeros((BP, 2 * H), jnp.float32)                          # [h_f | h_b]
    c = jnp.zeros((BP, 2 * H), jnp.float32)
    for s in range(T):
        tb = T - 1 - s
        # bf16 MXU operands, f32 accumulation; gate inputs already swizzled per step.
        gates = (jnp.dot(h.astype(jnp.bfloat16), whh,
                         preferred_element_type=jnp.float32)
                 + gx_s[s * BP:(s + 1) * BP, :])                     # (BP, 8H)
        sig = jax.nn.sigmoid(gates[:, :6 * H])                       # i, f, o (both dirs)
        g = jnp.tanh(gates[:, 6 * H:])                               # g (both dirs)
        i = sig[:, :2 * H]
        f = sig[:, 2 * H:4 * H]
        o = sig[:, 4 * H:6 * H]
        c = f * c + i * g
        h = o * jnp.tanh(c)
        hob_s[s * BP:(s + 1) * BP, :H] = h[:, :H]                    # fwd output at time s
        hob_s[tb * BP:(tb + 1) * BP, H:] = h[:, H:]                  # bwd output at time T-1-s

    # ---- batched output projection over all T*Bp rows, lane-dense store ----
    out_ref[...] = (jnp.dot(hob_s[...], fc_ref[:2 * H, :],
                            preferred_element_type=jnp.float32)
                    + fc_ref[2 * H:2 * H + 1, :])


def bilstm_forward(text, packed):
    """text: (SEQ, BATCH) int32 token ids -> (SEQ, BATCH, OUT) float32."""
    BP = BATCH_PAD
    text_pad = jnp.full((SEQ, BP), PAD_IDX, jnp.int32).at[:, :BATCH].set(text)
    # col 0: token at time t, col 1: token at time T-1-t (same batch lane).
    ids2 = jnp.stack([text_pad, text_pad[::-1]], axis=-1).reshape(TBP, 2)

    vmem = lambda: pl.BlockSpec(memory_space=pltpu.MemorySpace.VMEM)
    out2d = pl.pallas_call(
        bilstm_kernel,
        out_shape=jax.ShapeDtypeStruct((TBP, OUT_PAD), jnp.float32),
        in_specs=[vmem() for _ in range(4)],
        out_specs=vmem(),
        scratch_shapes=[
            pltpu.VMEM((TBP, G8), jnp.float32),        # swizzled gate inputs
            pltpu.VMEM((TBP, 2 * HID), jnp.float32),   # [fwd | bwd] hidden outputs
        ],
    )(ids2, packed["table"], packed["whh_bf16"], packed["fc_pack"])
    return out2d.reshape(SEQ, BP, OUT_PAD)[:, :BATCH, :OUT]


# ------------------------- parameter init & prepacking -------------------------

def init_raw_params(key):
    ks = jax.random.split(key, 12)
    scale = 1.0 / sqrt(HID)

    def u(k, shape):
        return jax.random.uniform(k, shape, jnp.float32, minval=-scale, maxval=scale)

    # nn.Embedding: N(0,1) init, padding_idx row zeroed
    emb_w = jax.random.normal(ks[0], (VOCAB, EMBED), jnp.float32)
    emb_w = emb_w.at[PAD_IDX].set(0.0)

    # nn.LSTM (bidirectional, 1 layer), PyTorch gate order [i, f, g, o]
    w_ih_f = u(ks[1], (4 * HID, EMBED))
    w_hh_f = u(ks[2], (4 * HID, HID))
    b_f = u(ks[3], (4 * HID,)) + u(ks[4], (4 * HID,))   # b_ih + b_hh
    w_ih_b = u(ks[5], (4 * HID, EMBED))
    w_hh_b = u(ks[6], (4 * HID, HID))
    b_b = u(ks[7], (4 * HID,)) + u(ks[8], (4 * HID,))

    # nn.Linear(2H, OUT)
    lin_scale = 1.0 / sqrt(2 * HID)
    w_fc = jax.random.uniform(ks[9], (OUT, 2 * HID), jnp.float32,
                              minval=-lin_scale, maxval=lin_scale)
    b_fc = jax.random.uniform(ks[10], (OUT,), jnp.float32,
                              minval=-lin_scale, maxval=lin_scale)
    return dict(emb_w=emb_w, w_ih_f=w_ih_f, w_hh_f=w_hh_f, b_f=b_f,
                w_ih_b=w_ih_b, w_hh_b=w_hh_b, b_b=b_b, w_fc=w_fc, b_fc=b_fc)


def _reorder_gates(w):
    """Columns [i|f|g|o] (blocks of H) -> [i|f|o|g]."""
    H = HID
    return jnp.concatenate(
        [w[..., :H], w[..., H:2 * H], w[..., 3 * H:], w[..., 2 * H:3 * H]], axis=-1)


def _interleave_dirs(wf, wb):
    """Interleave fwd/bwd per gate: [i_f,i_b,f_f,f_b,o_f,o_b,g_f,g_b] (8H wide)."""
    H = HID
    parts = []
    for k in range(4):
        parts.append(wf[..., k * H:(k + 1) * H])
        parts.append(wb[..., k * H:(k + 1) * H])
    return jnp.concatenate(parts, axis=-1)


def pack_params(raw):
    H = HID

    # Fused input->gates weight (E, 8H) and bias (1, 8H) in the interleaved column layout.
    wih_f = _reorder_gates(raw["w_ih_f"].T)               # (E, 4H)
    wih_b = _reorder_gates(raw["w_ih_b"].T)
    wih_all = _interleave_dirs(wih_f, wih_b)              # (E, 8H)
    b_all = _interleave_dirs(_reorder_gates(raw["b_f"]),
                             _reorder_gates(raw["b_b"]))[None, :]      # (1, 8H)

    # One-hot gate table: emb @ W_ih + bias, split by direction along columns.
    proj = raw["emb_w"] @ wih_all                          # (V, 8H)
    col = jnp.arange(G8)
    fwd_cols = ((col // H) % 2) == 0                       # even H-blocks = forward direction
    proj_f = jnp.where(fwd_cols[None, :], proj, 0.0)
    proj_b = jnp.where(fwd_cols[None, :], 0.0, proj)
    bias_f = jnp.where(fwd_cols[None, :], b_all, 0.0)
    bias_b = jnp.where(fwd_cols[None, :], 0.0, b_all)
    table = jnp.concatenate([proj_f, bias_f, proj_b, bias_b], axis=0)  # (2V+2, 8H)
    table = jnp.pad(table, ((0, KTAB - table.shape[0]), (0, 0)))       # (128, 8H)

    # Recurrent weights, block-diagonal over direction, prepacked bf16 for the MXU.
    whh_f = _reorder_gates(raw["w_hh_f"].T)                # (H, 4H)
    whh_b = _reorder_gates(raw["w_hh_b"].T)
    zeros = jnp.zeros((H, 4 * H), jnp.float32)
    whh_all = _interleave_dirs(jnp.concatenate([whh_f, zeros], axis=0),
                               jnp.concatenate([zeros, whh_b], axis=0))  # (2H, 8H)
    whh_bf16 = whh_all.astype(jnp.bfloat16)

    # Final linear: W_fc^T lane-padded to 128, bias appended as the last row.
    wfc_t = raw["w_fc"].T                                  # (2H, OUT), rows [0:H]=fwd, [H:]=bwd
    wfc_pad = jnp.zeros((2 * H, OUT_PAD), jnp.float32).at[:, :OUT].set(wfc_t)
    bfc_pad = jnp.zeros((1, OUT_PAD), jnp.float32).at[0, :OUT].set(raw["b_fc"])
    fc_pack = jnp.concatenate([wfc_pad, bfc_pad], axis=0)  # (2H+1, 128)

    return dict(table=table, whh_bf16=whh_bf16, fc_pack=fc_pack)


# ------------------------- pure-JAX reference (correctness check) -------------------------

def bilstm_reference(text, raw):
    H = HID
    emb = raw["emb_w"][text]                               # (T, B, E)

    def run_dir(w_ih, w_hh, b, reverse):
        h = jnp.zeros((BATCH, H), jnp.float32)
        c = jnp.zeros((BATCH, H), jnp.float32)
        outs = [None] * SEQ
        order = range(SEQ - 1, -1, -1) if reverse else range(SEQ)
        for t in order:
            gates = emb[t] @ w_ih.T + h @ w_hh.T + b
            i = jax.nn.sigmoid(gates[:, :H])
            f = jax.nn.sigmoid(gates[:, H:2 * H])
            g = jnp.tanh(gates[:, 2 * H:3 * H])
            o = jax.nn.sigmoid(gates[:, 3 * H:])
            c = f * c + i * g
            h = o * jnp.tanh(c)
            outs[t] = h
        return jnp.stack(outs)                             # (T, B, H)

    out_f = run_dir(raw["w_ih_f"], raw["w_hh_f"], raw["b_f"], False)
    out_b = run_dir(raw["w_ih_b"], raw["w_hh_b"], raw["b_b"], True)
    outs = jnp.concatenate([out_f, out_b], axis=-1)        # (T, B, 2H)
    return outs @ raw["w_fc"].T + raw["b_fc"]


if __name__ == "__main__":
    key = jax.random.PRNGKey(0)
    k_tok, k_par = jax.random.split(key)

    # text: (seq_len, batch) integer token ids
    text = jax.random.randint(k_tok, (SEQ, BATCH), 0, VOCAB, dtype=jnp.int32)
    raw = init_raw_params(k_par)
    packed = pack_params(raw)

    predictions = bilstm_forward(text, packed)
    predictions = jax.block_until_ready(predictions)

    assert predictions.shape == (SEQ, BATCH, OUT)
    assert bool(jnp.all(jnp.isfinite(predictions)))

    # Reference is pure f32; the kernel feeds the recurrent matmul bf16 operands with f32
    # accumulation, so allow ~1e-2 max-abs (typical error is ~1e-3 at these magnitudes).
    ref = bilstm_reference(text, raw)
    max_err = float(jnp.max(jnp.abs(predictions - ref)))
    assert max_err < 1e-2, f"mismatch vs pure-JAX reference: {max_err}"
    print("KERNEL_OK")
</pallas_src>

<mosaic_0001>
module attributes {stable_mosaic.version = 11 : i64} {
  func.func @bilstm_kernel(%arg0: memref<64x2xi32, #tpu.memory_space<vmem>>, %arg1: memref<128x256xf32, #tpu.memory_space<vmem>>, %arg2: memref<64x256xbf16, #tpu.memory_space<vmem>>, %arg3: memref<65x128xf32, #tpu.memory_space<vmem>>, %arg4: memref<64x128xf32, #tpu.memory_space<vmem>>, %arg5: memref<64x256xf32, #tpu.memory_space<vmem>>, %arg6: memref<64x64xf32, #tpu.memory_space<vmem>>) attributes {dimension_semantics = [], scalar_prefetch = 0 : i64, scratch_operands = 2 : i64, tpu.core_type = #tpu.core_type<tc>} {
    %c0 = arith.constant 0 : index
    %c0_0 = arith.constant 0 : index
    %0 = vector.load %arg0[%c0, %c0_0] : memref<64x2xi32, #tpu.memory_space<vmem>>, vector<64x2xi32>
    %1 = vector.extract_strided_slice %0 {offsets = [0, 0], sizes = [64, 1], strides = [1, 1]} : vector<64x2xi32> to vector<64x1xi32>
    %2 = vector.extract_strided_slice %0 {offsets = [0, 1], sizes = [64, 1], strides = [1, 1]} : vector<64x2xi32> to vector<64x1xi32>
    %3 = tpu.iota {dimensions = array<i32: 1>} : vector<64x128xi32>
    %4 = vector.broadcast %1 : vector<64x1xi32> to vector<64x128xi32>
    %5 = arith.cmpi eq, %3, %4 : vector<64x128xi32>
    %c32_i32 = arith.constant 32 : i32
    %6 = vector.broadcast %c32_i32 : i32 to vector<64x128xi32>
    %7 = arith.cmpi eq, %3, %6 : vector<64x128xi32>
    %8 = arith.ori %5, %7 : vector<64x128xi1>
    %c33_i32 = arith.constant 33 : i32
    %9 = vector.broadcast %c33_i32 : i32 to vector<64x1xi32>
    %10 = arith.addi %2, %9 : vector<64x1xi32>
    %11 = vector.broadcast %10 : vector<64x1xi32> to vector<64x128xi32>
    %12 = arith.cmpi eq, %3, %11 : vector<64x128xi32>
    %13 = arith.ori %8, %12 : vector<64x128xi1>
    %c65_i32 = arith.constant 65 : i32
    %14 = vector.broadcast %c65_i32 : i32 to vector<64x128xi32>
    %15 = arith.cmpi eq, %3, %14 : vector<64x128xi32>
    %16 = arith.ori %13, %15 : vector<64x128xi1>
    %17 = arith.extui %16 : vector<64x128xi1> to vector<64x128xi32>
    %18 = arith.sitofp %17 : vector<64x128xi32> to vector<64x128xf32>
    %c0_1 = arith.constant 0 : index
    %c0_2 = arith.constant 0 : index
    %19 = vector.load %arg1[%c0_1, %c0_2] : memref<128x256xf32, #tpu.memory_space<vmem>>, vector<128x256xf32>
    %cst = arith.constant dense<0.000000e+00> : vector<64x256xf32>
    %20 = tpu.matmul %18, %19, %cst {dimension_numbers = #tpu.dot_dimension_numbers<[1], [0], [0], [1], [0, 0, 1, 1], [], []>} : vector<64x128xf32>, vector<128x256xf32>, vector<64x256xf32> -> vector<64x256xf32>
    %c0_3 = arith.constant 0 : index
    %c0_4 = arith.constant 0 : index
    %21 = vector.load %arg5[%c0_3, %c0_4] : memref<64x256xf32, #tpu.memory_space<vmem>>, vector<64x256xf32>
    tpu.vector_store %arg5[%c0_3, %c0_4], %20 {strides = array<i32>} : memref<64x256xf32, #tpu.memory_space<vmem>>, vector<64x256xf32>,
    %c0_5 = arith.constant 0 : index
    %c0_6 = arith.constant 0 : index
    %22 = vector.load %arg2[%c0_5, %c0_6] : memref<64x256xbf16, #tpu.memory_space<vmem>>, vector<64x256xbf16>
    %cst_7 = arith.constant 0.000000e+00 : f32
    %23 = vector.broadcast %cst_7 : f32 to vector<8x64xf32>
    %cst_8 = arith.constant 0.000000e+00 : f32
    %24 = vector.broadcast %cst_8 : f32 to vector<8x64xf32>
    %25 = arith.truncf %23 : vector<8x64xf32> to vector<8x64xbf16>
    %cst_9 = arith.constant dense<0.000000e+00> : vector<8x256xf32>
    %26 = tpu.matmul %25, %22, %cst_9 {dimension_numbers = #tpu.dot_dimension_numbers<[1], [0], [0], [1], [0, 0, 1, 1], [], []>} : vector<8x64xbf16>, vector<64x256xbf16>, vector<8x256xf32> -> vector<8x256xf32>
    %c0_10 = arith.constant 0 : index
    %c0_11 = arith.constant 0 : index
    %27 = vector.load %arg5[%c0_10, %c0_11] : memref<64x256xf32, #tpu.memory_space<vmem>>, vector<8x256xf32>
    %28 = arith.addf %26, %27 : vector<8x256xf32>
    %29 = vector.extract_strided_slice %28 {offsets = [0, 0], sizes = [8, 192], strides = [1, 1]} : vector<8x256xf32> to vector<8x192xf32>
    %30 = arith.negf %29 : vector<8x192xf32>
    %31 = math.exp %30 : vector<8x192xf32>
    %cst_12 = arith.constant 1.000000e+00 : f32
    %32 = vector.broadcast %cst_12 : f32 to vector<8x192xf32>
    %33 = arith.addf %32, %31 : vector<8x192xf32>
    %34 = arith.divf %32, %33 : vector<8x192xf32>
    %35 = vector.extract_strided_slice %28 {offsets = [0, 192], sizes = [8, 64], strides = [1, 1]} : vector<8x256xf32> to vector<8x64xf32>
    %36 = math.tanh %35 : vector<8x64xf32>
    %37 = vector.extract_strided_slice %34 {offsets = [0, 0], sizes = [8, 64], strides = [1, 1]} : vector<8x192xf32> to vector<8x64xf32>
    %38 = vector.extract_strided_slice %34 {offsets = [0, 64], sizes = [8, 64], strides = [1, 1]} : vector<8x192xf32> to vector<8x64xf32>
    %39 = vector.extract_strided_slice %34 {offsets = [0, 128], sizes = [8, 64], strides = [1, 1]} : vector<8x192xf32> to vector<8x64xf32>
    %40 = arith.mulf %38, %24 : vector<8x64xf32>
    %41 = arith.mulf %37, %36 : vector<8x64xf32>
    %42 = arith.addf %40, %41 : vector<8x64xf32>
    %43 = math.tanh %42 : vector<8x64xf32>
    %44 = arith.mulf %39, %43 : vector<8x64xf32>
    %45 = vector.extract_strided_slice %44 {offsets = [0, 0], sizes = [8, 32], strides = [1, 1]} : vector<8x64xf32> to vector<8x32xf32>
    %c0_13 = arith.constant 0 : index
    %c0_14 = arith.constant 0 : index
    %46 = vector.load %arg6[%c0_13, %c0_14] : memref<64x64xf32, #tpu.memory_space<vmem>>, vector<8x32xf32>
    tpu.vector_store %arg6[%c0_13, %c0_14], %45 {strides = array<i32>} : memref<64x64xf32, #tpu.memory_space<vmem>>, vector<8x32xf32>,
    %47 = vector.extract_strided_slice %44 {offsets = [0, 32], sizes = [8, 32], strides = [1, 1]} : vector<8x64xf32> to vector<8x32xf32>
    %c56 = arith.constant 56 : index
    %c32 = arith.constant 32 : index
    %48 = vector.load %arg6[%c56, %c32] : memref<64x64xf32, #tpu.memory_space<vmem>>, vector<8x32xf32>
    tpu.vector_store %arg6[%c56, %c32], %47 {strides = array<i32>} : memref<64x64xf32, #tpu.memory_space<vmem>>, vector<8x32xf32>,
    %49 = arith.truncf %44 : vector<8x64xf32> to vector<8x64xbf16>
    %cst_15 = arith.constant dense<0.000000e+00> : vector<8x256xf32>
    %50 = tpu.matmul %49, %22, %cst_15 {dimension_numbers = #tpu.dot_dimension_numbers<[1], [0], [0], [1], [0, 0, 1, 1], [], []>} : vector<8x64xbf16>, vector<64x256xbf16>, vector<8x256xf32> -> vector<8x256xf32>
    %c8 = arith.constant 8 : index
    %c0_16 = arith.constant 0 : index
    %51 = vector.load %arg5[%c8, %c0_16] : memref<64x256xf32, #tpu.memory_space<vmem>>, vector<8x256xf32>
    %52 = arith.addf %50, %51 : vector<8x256xf32>
    %53 = vector.extract_strided_slice %52 {offsets = [0, 0], sizes = [8, 192], strides = [1, 1]} : vector<8x256xf32> to vector<8x192xf32>
    %54 = arith.negf %53 : vector<8x192xf32>
    %55 = math.exp %54 : vector<8x192xf32>
    %cst_17 = arith.constant 1.000000e+00 : f32
    %56 = vector.broadcast %cst_17 : f32 to vector<8x192xf32>
    %57 = arith.addf %56, %55 : vector<8x192xf32>
    %58 = arith.divf %56, %57 : vector<8x192xf32>
    %59 = vector.extract_strided_slice %52 {offsets = [0, 192], sizes = [8, 64], strides = [1, 1]} : vector<8x256xf32> to vector<8x64xf32>
    %60 = math.tanh %59 : vector<8x64xf32>
    %61 = vector.extract_strided_slice %58 {offsets = [0, 0], sizes = [8, 64], strides = [1, 1]} : vector<8x192xf32> to vector<8x64xf32>
    %62 = vector.extract_strided_slice %58 {offsets = [0, 64], sizes = [8, 64], strides = [1, 1]} : vector<8x192xf32> to vector<8x64xf32>
    %63 = vector.extract_strided_slice %58 {offsets = [0, 128], sizes = [8, 64], strides = [1, 1]} : vector<8x192xf32> to vector<8x64xf32>
    %64 = arith.mulf %62, %42 : vector<8x64xf32>
    %65 = arith.mulf %61, %60 : vector<8x64xf32>
    %66 = arith.addf %64, %65 : vector<8x64xf32>
    %67 = math.tanh %66 : vector<8x64xf32>
    %68 = arith.mulf %63, %67 : vector<8x64xf32>
    %69 = vector.extract_strided_slice %68 {offsets = [0, 0], sizes = [8, 32], strides = [1, 1]} : vector<8x64xf32> to vector<8x32xf32>
    %c8_18 = arith.constant 8 : index
    %c0_19 = arith.constant 0 : index
    %70 = vector.load %arg6[%c8_18, %c0_19] : memref<64x64xf32, #tpu.memory_space<vmem>>, vector<8x32xf32>
    tpu.vector_store %arg6[%c8_18, %c0_19], %69 {strides = array<i32>} : memref<64x64xf32, #tpu.memory_space<vmem>>, vector<8x32xf32>,
    %71 = vector.extract_strided_slice %68 {offsets = [0, 32], sizes = [8, 32], strides = [1, 1]} : vector<8x64xf32> to vector<8x32xf32>
    %c48 = arith.constant 48 : index
    %c32_20 = arith.constant 32 : index
    %72 = vector.load %arg6[%c48, %c32_20] : memref<64x64xf32, #tpu.memory_space<vmem>>, vector<8x32xf32>
    tpu.vector_store %arg6[%c48, %c32_20], %71 {strides = array<i32>} : memref<64x64xf32, #tpu.memory_space<vmem>>, vector<8x32xf32>,
    %73 = arith.truncf %68 : vector<8x64xf32> to vector<8x64xbf16>
    %cst_21 = arith.constant dense<0.000000e+00> : vector<8x256xf32>
    %74 = tpu.matmul %73, %22, %cst_21 {dimension_numbers = #tpu.dot_dimension_numbers<[1], [0], [0], [1], [0, 0, 1, 1], [], []>} : vector<8x64xbf16>, vector<64x256xbf16>, vector<8x256xf32> -> vector<8x256xf32>
    %c16 = arith.constant 16 : index
    %c0_22 = arith.constant 0 : index
    %75 = vector.load %arg5[%c16, %c0_22] : memref<64x256xf32, #tpu.memory_space<vmem>>, vector<8x256xf32>
    %76 = arith.addf %74, %75 : vector<8x256xf32>
    %77 = vector.extract_strided_slice %76 {offsets = [0, 0], sizes = [8, 192], strides = [1, 1]} : vector<8x256xf32> to vector<8x192xf32>
    %78 = arith.negf %77 : vector<8x192xf32>
    %79 = math.exp %78 : vector<8x192xf32>
    %cst_23 = arith.constant 1.000000e+00 : f32
    %80 = vector.broadcast %cst_23 : f32 to vector<8x192xf32>
    %81 = arith.addf %80, %79 : vector<8x192xf32>
    %82 = arith.divf %80, %81 : vector<8x192xf32>
    %83 = vector.extract_strided_slice %76 {offsets = [0, 192], sizes = [8, 64], strides = [1, 1]} : vector<8x256xf32> to vector<8x64xf32>
    %84 = math.tanh %83 : vector<8x64xf32>
    %85 = vector.extract_strided_slice %82 {offsets = [0, 0], sizes = [8, 64], strides = [1, 1]} : vector<8x192xf32> to vector<8x64xf32>
    %86 = vector.extract_strided_slice %82 {offsets = [0, 64], sizes = [8, 64], strides = [1, 1]} : vector<8x192xf32> to vector<8x64xf32>
    %87 = vector.extract_strided_slice %82 {offsets = [0, 128], sizes = [8, 64], strides = [1, 1]} : vector<8x192xf32> to vector<8x64xf32>
    %88 = arith.mulf %86, %66 : vector<8x64xf32>
    %89 = arith.mulf %85, %84 : vector<8x64xf32>
    %90 = arith.addf %88, %89 : vector<8x64xf32>
    %91 = math.tanh %90 : vector<8x64xf32>
    %92 = arith.mulf %87, %91 : vector<8x64xf32>
    %93 = vector.extract_strided_slice %92 {offsets = [0, 0], sizes = [8, 32], strides = [1, 1]} : vector<8x64xf32> to vector<8x32xf32>
    %c16_24 = arith.constant 16 : index
    %c0_25 = arith.constant 0 : index
    %94 = vector.load %arg6[%c16_24, %c0_25] : memref<64x64xf32, #tpu.memory_space<vmem>>, vector<8x32xf32>
    tpu.vector_store %arg6[%c16_24, %c0_25], %93 {strides = array<i32>} : memref<64x64xf32, #tpu.memory_space<vmem>>, vector<8x32xf32>,
    %95 = vector.extract_strided_slice %92 {offsets = [0, 32], sizes = [8, 32], strides = [1, 1]} : vector<8x64xf32> to vector<8x32xf32>
    %c40 = arith.constant 40 : index
    %c32_26 = arith.constant 32 : index
    %96 = vector.load %arg6[%c40, %c32_26] : memref<64x64xf32, #tpu.memory_space<vmem>>, vector<8x32xf32>
    tpu.vector_store %arg6[%c40, %c32_26], %95 {strides = array<i32>} : memref<64x64xf32, #tpu.memory_space<vmem>>, vector<8x32xf32>,
    %97 = arith.truncf %92 : vector<8x64xf32> to vector<8x64xbf16>
    %cst_27 = arith.constant dense<0.000000e+00> : vector<8x256xf32>
    %98 = tpu.matmul %97, %22, %cst_27 {dimension_numbers = #tpu.dot_dimension_numbers<[1], [0], [0], [1], [0, 0, 1, 1], [], []>} : vector<8x64xbf16>, vector<64x256xbf16>, vector<8x256xf32> -> vector<8x256xf32>
    %c24 = arith.constant 24 : index
    %c0_28 = arith.constant 0 : index
    %99 = vector.load %arg5[%c24, %c0_28] : memref<64x256xf32, #tpu.memory_space<vmem>>, vector<8x256xf32>
    %100 = arith.addf %98, %99 : vector<8x256xf32>
    %101 = vector.extract_strided_slice %100 {offsets = [0, 0], sizes = [8, 192], strides = [1, 1]} : vector<8x256xf32> to vector<8x192xf32>
    %102 = arith.negf %101 : vector<8x192xf32>
    %103 = math.exp %102 : vector<8x192xf32>
    %cst_29 = arith.constant 1.000000e+00 : f32
    %104 = vector.broadcast %cst_29 : f32 to vector<8x192xf32>
    %105 = arith.addf %104, %103 : vector<8x192xf32>
    %106 = arith.divf %104, %105 : vector<8x192xf32>
    %107 = vector.extract_strided_slice %100 {offsets = [0, 192], sizes = [8, 64], strides = [1, 1]} : vector<8x256xf32> to vector<8x64xf32>
    %108 = math.tanh %107 : vector<8x64xf32>
    %109 = vector.extract_strided_slice %106 {offsets = [0, 0], sizes = [8, 64], strides = [1, 1]} : vector<8x192xf32> to vector<8x64xf32>
    %110 = vector.extract_strided_slice %106 {offsets = [0, 64], sizes = [8, 64], strides = [1, 1]} : vector<8x192xf32> to vector<8x64xf32>
    %111 = vector.extract_strided_slice %106 {offsets = [0, 128], sizes = [8, 64], strides = [1, 1]} : vector<8x192xf32> to vector<8x64xf32>
    %112 = arith.mulf %110, %90 : vector<8x64xf32>
    %113 = arith.mulf %109, %108 : vector<8x64xf32>
    %114 = arith.addf %112, %113 : vector<8x64xf32>
    %115 = math.tanh %114 : vector<8x64xf32>
    %116 = arith.mulf %111, %115 : vector<8x64xf32>
    %117 = vector.extract_strided_slice %116 {offsets = [0, 0], sizes = [8, 32], strides = [1, 1]} : vector<8x64xf32> to vector<8x32xf32>
    %c24_30 = arith.constant 24 : index
    %c0_31 = arith.constant 0 : index
    %118 = vector.load %arg6[%c24_30, %c0_31] : memref<64x64xf32, #tpu.memory_space<vmem>>, vector<8x32xf32>
    tpu.vector_store %arg6[%c24_30, %c0_31], %117 {strides = array<i32>} : memref<64x64xf32, #tpu.memory_space<vmem>>, vector<8x32xf32>,
    %119 = vector.extract_strided_slice %116 {offsets = [0, 32], sizes = [8, 32], strides = [1, 1]} : vector<8x64xf32> to vector<8x32xf32>
    %c32_32 = arith.constant 32 : index
    %c32_33 = arith.constant 32 : index
    %120 = vector.load %arg6[%c32_32, %c32_33] : memref<64x64xf32, #tpu.memory_space<vmem>>, vector<8x32xf32>
    tpu.vector_store %arg6[%c32_32, %c32_33], %119 {strides = array<i32>} : memref<64x64xf32, #tpu.memory_space<vmem>>, vector<8x32xf32>,
    %121 = arith.truncf %116 : vector<8x64xf32> to vector<8x64xbf16>
    %cst_34 = arith.constant dense<0.000000e+00> : vector<8x256xf32>
    %122 = tpu.matmul %121, %22, %cst_34 {dimension_numbers = #tpu.dot_dimension_numbers<[1], [0], [0], [1], [0, 0, 1, 1], [], []>} : vector<8x64xbf16>, vector<64x256xbf16>, vector<8x256xf32> -> vector<8x256xf32>
    %c32_35 = arith.constant 32 : index
    %c0_36 = arith.constant 0 : index
    %123 = vector.load %arg5[%c32_35, %c0_36] : memref<64x256xf32, #tpu.memory_space<vmem>>, vector<8x256xf32>
    %124 = arith.addf %122, %123 : vector<8x256xf32>
    %125 = vector.extract_strided_slice %124 {offsets = [0, 0], sizes = [8, 192], strides = [1, 1]} : vector<8x256xf32> to vector<8x192xf32>
    %126 = arith.negf %125 : vector<8x192xf32>
    %127 = math.exp %126 : vector<8x192xf32>
    %cst_37 = arith.constant 1.000000e+00 : f32
    %128 = vector.broadcast %cst_37 : f32 to vector<8x192xf32>
    %129 = arith.addf %128, %127 : vector<8x192xf32>
    %130 = arith.divf %128, %129 : vector<8x192xf32>
    %131 = vector.extract_strided_slice %124 {offsets = [0, 192], sizes = [8, 64], strides = [1, 1]} : vector<8x256xf32> to vector<8x64xf32>
    %132 = math.tanh %131 : vector<8x64xf32>
    %133 = vector.extract_strided_slice %130 {offsets = [0, 0], sizes = [8, 64], strides = [1, 1]} : vector<8x192xf32> to vector<8x64xf32>
    %134 = vector.extract_strided_slice %130 {offsets = [0, 64], sizes = [8, 64], strides = [1, 1]} : vector<8x192xf32> to vector<8x64xf32>
    %135 = vector.extract_strided_slice %130 {offsets = [0, 128], sizes = [8, 64], strides = [1, 1]} : vector<8x192xf32> to vector<8x64xf32>
    %136 = arith.mulf %134, %114 : vector<8x64xf32>
    %137 = arith.mulf %133, %132 : vector<8x64xf32>
    %138 = arith.addf %136, %137 : vector<8x64xf32>
    %139 = math.tanh %138 : vector<8x64xf32>
    %140 = arith.mulf %135, %139 : vector<8x64xf32>
    %141 = vector.extract_strided_slice %140 {offsets = [0, 0], sizes = [8, 32], strides = [1, 1]} : vector<8x64xf32> to vector<8x32xf32>
    %c32_38 = arith.constant 32 : index
    %c0_39 = arith.constant 0 : index
    %142 = vector.load %arg6[%c32_38, %c0_39] : memref<64x64xf32, #tpu.memory_space<vmem>>, vector<8x32xf32>
    tpu.vector_store %arg6[%c32_38, %c0_39], %141 {strides = array<i32>} : memref<64x64xf32, #tpu.memory_space<vmem>>, vector<8x32xf32>,
    %143 = vector.extract_strided_slice %140 {offsets = [0, 32], sizes = [8, 32], strides = [1, 1]} : vector<8x64xf32> to vector<8x32xf32>
    %c24_40 = arith.constant 24 : index
    %c32_41 = arith.constant 32 : index
    %144 = vector.load %arg6[%c24_40, %c32_41] : memref<64x64xf32, #tpu.memory_space<vmem>>, vector<8x32xf32>
    tpu.vector_store %arg6[%c24_40, %c32_41], %143 {strides = array<i32>} : memref<64x64xf32, #tpu.memory_space<vmem>>, vector<8x32xf32>,
    %145 = arith.truncf %140 : vector<8x64xf32> to vector<8x64xbf16>
    %cst_42 = arith.constant dense<0.000000e+00> : vector<8x256xf32>
    %146 = tpu.matmul %145, %22, %cst_42 {dimension_numbers = #tpu.dot_dimension_numbers<[1], [0], [0], [1], [0, 0, 1, 1], [], []>} : vector<8x64xbf16>, vector<64x256xbf16>, vector<8x256xf32> -> vector<8x256xf32>
    %c40_43 = arith.constant 40 : index
    %c0_44 = arith.constant 0 : index
    %147 = vector.load %arg5[%c40_43, %c0_44] : memref<64x256xf32, #tpu.memory_space<vmem>>, vector<8x256xf32>
    %148 = arith.addf %146, %147 : vector<8x256xf32>
    %149 = vector.extract_strided_slice %148 {offsets = [0, 0], sizes = [8, 192], strides = [1, 1]} : vector<8x256xf32> to vector<8x192xf32>
    %150 = arith.negf %149 : vector<8x192xf32>
    %151 = math.exp %150 : vector<8x192xf32>
    %cst_45 = arith.constant 1.000000e+00 : f32
    %152 = vector.broadcast %cst_45 : f32 to vector<8x192xf32>
    %153 = arith.addf %152, %151 : vector<8x192xf32>
    %154 = arith.divf %152, %153 : vector<8x192xf32>
    %155 = vector.extract_strided_slice %148 {offsets = [0, 192], sizes = [8, 64], strides = [1, 1]} : vector<8x256xf32> to vector<8x64xf32>
    %156 = math.tanh %155 : vector<8x64xf32>
    %157 = vector.extract_strided_slice %154 {offsets = [0, 0], sizes = [8, 64], strides = [1, 1]} : vector<8x192xf32> to vector<8x64xf32>
    %158 = vector.extract_strided_slice %154 {offsets = [0, 64], sizes = [8, 64], strides = [1, 1]} : vector<8x192xf32> to vector<8x64xf32>
    %159 = vector.extract_strided_slice %154 {offsets = [0, 128], sizes = [8, 64], strides = [1, 1]} : vector<8x192xf32> to vector<8x64xf32>
    %160 = arith.mulf %158, %138 : vector<8x64xf32>
    %161 = arith.mulf %157, %156 : vector<8x64xf32>
    %162 = arith.addf %160, %161 : vector<8x64xf32>
    %163 = math.tanh %162 : vector<8x64xf32>
    %164 = arith.mulf %159, %163 : vector<8x64xf32>
    %165 = vector.extract_strided_slice %164 {offsets = [0, 0], sizes = [8, 32], strides = [1, 1]} : vector<8x64xf32> to vector<8x32xf32>
    %c40_46 = arith.constant 40 : index
    %c0_47 = arith.constant 0 : index
    %166 = vector.load %arg6[%c40_46, %c0_47] : memref<64x64xf32, #tpu.memory_space<vmem>>, vector<8x32xf32>
    tpu.vector_store %arg6[%c40_46, %c0_47], %165 {strides = array<i32>} : memref<64x64xf32, #tpu.memory_space<vmem>>, vector<8x32xf32>,
    %167 = vector.extract_strided_slice %164 {offsets = [0, 32], sizes = [8, 32], strides = [1, 1]} : vector<8x64xf32> to vector<8x32xf32>
    %c16_48 = arith.constant 16 : index
    %c32_49 = arith.constant 32 : index
    %168 = vector.load %arg6[%c16_48, %c32_49] : memref<64x64xf32, #tpu.memory_space<vmem>>, vector<8x32xf32>
    tpu.vector_store %arg6[%c16_48, %c32_49], %167 {strides = array<i32>} : memref<64x64xf32, #tpu.memory_space<vmem>>, vector<8x32xf32>,
    %169 = arith.truncf %164 : vector<8x64xf32> to vector<8x64xbf16>
    %cst_50 = arith.constant dense<0.000000e+00> : vector<8x256xf32>
    %170 = tpu.matmul %169, %22, %cst_50 {dimension_numbers = #tpu.dot_dimension_numbers<[1], [0], [0], [1], [0, 0, 1, 1], [], []>} : vector<8x64xbf16>, vector<64x256xbf16>, vector<8x256xf32> -> vector<8x256xf32>
    %c48_51 = arith.constant 48 : index
    %c0_52 = arith.constant 0 : index
    %171 = vector.load %arg5[%c48_51, %c0_52] : memref<64x256xf32, #tpu.memory_space<vmem>>, vector<8x256xf32>
    %172 = arith.addf %170, %171 : vector<8x256xf32>
    %173 = vector.extract_strided_slice %172 {offsets = [0, 0], sizes = [8, 192], strides = [1, 1]} : vector<8x256xf32> to vector<8x192xf32>
    %174 = arith.negf %173 : vector<8x192xf32>
    %175 = math.exp %174 : vector<8x192xf32>
    %cst_53 = arith.constant 1.000000e+00 : f32
    %176 = vector.broadcast %cst_53 : f32 to vector<8x192xf32>
    %177 = arith.addf %176, %175 : vector<8x192xf32>
    %178 = arith.divf %176, %177 : vector<8x192xf32>
    %179 = vector.extract_strided_slice %172 {offsets = [0, 192], sizes = [8, 64], strides = [1, 1]} : vector<8x256xf32> to vector<8x64xf32>
    %180 = math.tanh %179 : vector<8x64xf32>
    %181 = vector.extract_strided_slice %178 {offsets = [0, 0], sizes = [8, 64], strides = [1, 1]} : vector<8x192xf32> to vector<8x64xf32>
    %182 = vector.extract_strided_slice %178 {offsets = [0, 64], sizes = [8, 64], strides = [1, 1]} : vector<8x192xf32> to vector<8x64xf32>
    %183 = vector.extract_strided_slice %178 {offsets = [0, 128], sizes = [8, 64], strides = [1, 1]} : vector<8x192xf32> to vector<8x64xf32>
    %184 = arith.mulf %182, %162 : vector<8x64xf32>
    %185 = arith.mulf %181, %180 : vector<8x64xf32>
    %186 = arith.addf %184, %185 : vector<8x64xf32>
    %187 = math.tanh %186 : vector<8x64xf32>
    %188 = arith.mulf %183, %187 : vector<8x64xf32>
    %189 = vector.extract_strided_slice %188 {offsets = [0, 0], sizes = [8, 32], strides = [1, 1]} : vector<8x64xf32> to vector<8x32xf32>
    %c48_54 = arith.constant 48 : index
    %c0_55 = arith.constant 0 : index
    %190 = vector.load %arg6[%c48_54, %c0_55] : memref<64x64xf32, #tpu.memory_space<vmem>>, vector<8x32xf32>
    tpu.vector_store %arg6[%c48_54, %c0_55], %189 {strides = array<i32>} : memref<64x64xf32, #tpu.memory_space<vmem>>, vector<8x32xf32>,
    %191 = vector.extract_strided_slice %188 {offsets = [0, 32], sizes = [8, 32], strides = [1, 1]} : vector<8x64xf32> to vector<8x32xf32>
    %c8_56 = arith.constant 8 : index
    %c32_57 = arith.constant 32 : index
    %192 = vector.load %arg6[%c8_56, %c32_57] : memref<64x64xf32, #tpu.memory_space<vmem>>, vector<8x32xf32>
    tpu.vector_store %arg6[%c8_56, %c32_57], %191 {strides = array<i32>} : memref<64x64xf32, #tpu.memory_space<vmem>>, vector<8x32xf32>,
    %193 = arith.truncf %188 : vector<8x64xf32> to vector<8x64xbf16>
    %cst_58 = arith.constant dense<0.000000e+00> : vector<8x256xf32>
    %194 = tpu.matmul %193, %22, %cst_58 {dimension_numbers = #tpu.dot_dimension_numbers<[1], [0], [0], [1], [0, 0, 1, 1], [], []>} : vector<8x64xbf16>, vector<64x256xbf16>, vector<8x256xf32> -> vector<8x256xf32>
    %c56_59 = arith.constant 56 : index
    %c0_60 = arith.constant 0 : index
    %195 = vector.load %arg5[%c56_59, %c0_60] : memref<64x256xf32, #tpu.memory_space<vmem>>, vector<8x256xf32>
    %196 = arith.addf %194, %195 : vector<8x256xf32>
    %197 = vector.extract_strided_slice %196 {offsets = [0, 0], sizes = [8, 192], strides = [1, 1]} : vector<8x256xf32> to vector<8x192xf32>
    %198 = arith.negf %197 : vector<8x192xf32>
    %199 = math.exp %198 : vector<8x192xf32>
    %cst_61 = arith.constant 1.000000e+00 : f32
    %200 = vector.broadcast %cst_61 : f32 to vector<8x192xf32>
    %201 = arith.addf %200, %199 : vector<8x192xf32>
    %202 = arith.divf %200, %201 : vector<8x192xf32>
    %203 = vector.extract_strided_slice %196 {offsets = [0, 192], sizes = [8, 64], strides = [1, 1]} : vector<8x256xf32> to vector<8x64xf32>
    %204 = math.tanh %203 : vector<8x64xf32>
    %205 = vector.extract_strided_slice %202 {offsets = [0, 0], sizes = [8, 64], strides = [1, 1]} : vector<8x192xf32> to vector<8x64xf32>
    %206 = vector.extract_strided_slice %202 {offsets = [0, 64], sizes = [8, 64], strides = [1, 1]} : vector<8x192xf32> to vector<8x64xf32>
    %207 = vector.extract_strided_slice %202 {offsets = [0, 128], sizes = [8, 64], strides = [1, 1]} : vector<8x192xf32> to vector<8x64xf32>
    %208 = arith.mulf %206, %186 : vector<8x64xf32>
    %209 = arith.mulf %205, %204 : vector<8x64xf32>
    %210 = arith.addf %208, %209 : vector<8x64xf32>
    %211 = math.tanh %210 : vector<8x64xf32>
    %212 = arith.mulf %207, %211 : vector<8x64xf32>
    %213 = vector.extract_strided_slice %212 {offsets = [0, 0], sizes = [8, 32], strides = [1, 1]} : vector<8x64xf32> to vector<8x32xf32>
    %c56_62 = arith.constant 56 : index
    %c0_63 = arith.constant 0 : index
    %214 = vector.load %arg6[%c56_62, %c0_63] : memref<64x64xf32, #tpu.memory_space<vmem>>, vector<8x32xf32>
    tpu.vector_store %arg6[%c56_62, %c0_63], %213 {strides = array<i32>} : memref<64x64xf32, #tpu.memory_space<vmem>>, vector<8x32xf32>,
    %215 = vector.extract_strided_slice %212 {offsets = [0, 32], sizes = [8, 32], strides = [1, 1]} : vector<8x64xf32> to vector<8x32xf32>
    %c0_64 = arith.constant 0 : index
    %c32_65 = arith.constant 32 : index
    %216 = vector.load %arg6[%c0_64, %c32_65] : memref<64x64xf32, #tpu.memory_space<vmem>>, vector<8x32xf32>
    tpu.vector_store %arg6[%c0_64, %c32_65], %215 {strides = array<i32>} : memref<64x64xf32, #tpu.memory_space<vmem>>, vector<8x32xf32>,
    %c0_66 = arith.constant 0 : index
    %c0_67 = arith.constant 0 : index
    %217 = vector.load %arg6[%c0_66, %c0_67] : memref<64x64xf32, #tpu.memory_space<vmem>>, vector<64x64xf32>
    %c0_68 = arith.constant 0 : index
    %c0_69 = arith.constant 0 : index
    %218 = vector.load %arg3[%c0_68, %c0_69] : memref<65x128xf32, #tpu.memory_space<vmem>>, vector<64x128xf32>
    %cst_70 = arith.constant dense<0.000000e+00> : vector<64x128xf32>
    %219 = tpu.matmul %217, %218, %cst_70 {dimension_numbers = #tpu.dot_dimension_numbers<[1], [0], [0], [1], [0, 0, 1, 1], [], []>} : vector<64x64xf32>, vector<64x128xf32>, vector<64x128xf32> -> vector<64x128xf32>
    %c64 = arith.constant 64 : index
    %c0_71 = arith.constant 0 : index
    %220 = vector.load %arg3[%c64, %c0_71] : memref<65x128xf32, #tpu.memory_space<vmem>>, vector<1x128xf32>
    %221 = vector.broadcast %220 : vector<1x128xf32> to vector<64x128xf32>
    %222 = arith.addf %219, %221 : vector<64x128xf32>
    %c0_72 = arith.constant 0 : index
    %c0_73 = arith.constant 0 : index
    %223 = vector.load %arg4[%c0_72, %c0_73] : memref<64x128xf32, #tpu.memory_space<vmem>>, vector<64x128xf32>
    tpu.vector_store %arg4[%c0_72, %c0_73], %222 {strides = array<i32>} : memref<64x128xf32, #tpu.memory_space<vmem>>, vector<64x128xf32>,
    return
  }
}

</mosaic_0001>

<bundles_post_ra>
// kernel: tpu_custom_call.1
= control target key start
LH: loop header
LB: loop body
LE: loop exit
PB: predicated region body
PF: predicated region fallthrough
CT: control target
= control target key end

     0   :  { %9 = vsyncpa [#allocation5], 0  ;;  %s1918_s0 = inlined_call_operand.vmem [shape: s32[64,2], index: 0, kind: input, shape index: {}]   ;;  %s1919_s1 = inlined_call_operand.hbm [shape: f32[128,256], index: 1, kind: input, shape index: {}]   ;;  %s1920_s2 = inlined_call_operand.hbm [shape: bf16[64,256], index: 2, kind: input, shape index: {}]   ;;  %s1921_s3 = inlined_call_operand.vmem [shape: f32[65,128], index: 3, kind: input, shape index: {}]   ;;  %s1922_s4 = inlined_call_operand.hbm [shape: f32[64,128], index: 4, kind: output, shape index: {}]  }
   0x1   :  { %10 = vsyncpa [#allocation8], 0 }
   0x2   :  { %11 = vsyncpa [#allocation6], 0  ;;  %s1536_s15 = smov [#allocation4]   ;;  %s1464_s19 = scalar_lea.hbm %s1919_s1, 4096 }
   0x3   :  { %s19_s16 = sshll.u32 %s1536_s15, 4  ;;  %p1465_p0 = scmp.ne.s32.totalorder %s1919_s1, %s1464_s19  ;;  %s20_s16 = int_to_ptr.vmem [resolvable:$true] %s19_s16 }
   0x4   :  { %p1468_p1 = scmp.lt.u32.totalorder %s1464_s19, %s1919_s1 }
   0x6   :  { %p1470_p2 = pnand %p1468_p1, %p1465_p0 }
   0x8   :  { %1473 = shalt.err (!%p1470_p2)
}
   0x9   :  { %s1474_s24 = scalar_lea.vmem %s20_s16, 4096  ;;  %p1479_p4 = scmp.lt.s32.totalorder %s20_s16, %s20_s16 }
   0xa   :  { %p1475_p3 = scmp.ne.s32.totalorder %s20_s16, %s1474_s24  ;;  %p1480_p5 = scmp.lt.s32.totalorder %s1474_s24, %s1474_s24 }
   0xc   :  { %p1481_p6 = por %p1480_p5, %p1479_p4 }
   0xe   :  { %p1482_p7 = pnand %p1481_p6, %p1475_p3 }
  0x10   :  { %1485 = shalt.err (!%p1482_p7)
}
  0x11   :  { %s1537_s25 = smov 256   ;;  %s1538_s26 = smov 16  }
  0x12   :  { %25 = dma.hbm_to_vmem [thread:$0]  %s1919_s1, 4096, %s20_s16, [#allocation5], %s1537_s25, %s1537_s25, %s1538_s26  }
  0x13   :  { %s1539_s29 = smov [#allocation7]   ;;  %s1486_s7 = scalar_lea.hbm %s1920_s2, 1024 }
  0x14   :  { %s31_s30 = sshll.u32 %s1539_s29, 4  ;;  %p1487_p8 = scmp.ne.s32.totalorder %s1920_s2, %s1486_s7  ;;  %s32_s30 = int_to_ptr.vmem [resolvable:$true] %s31_s30 }
  0x15   :  { %p1490_p9 = scmp.lt.u32.totalorder %s1486_s7, %s1920_s2 }
  0x17   :  { %p1492_p10 = pnand %p1490_p9, %p1487_p8 }
  0x19   :  { %1495 = shalt.err (!%p1492_p10)
}
  0x1a   :  { %s1496_s12 = scalar_lea.vmem %s32_s30, 1024  ;;  %p1501_p12 = scmp.lt.s32.totalorder %s32_s30, %s32_s30 }
  0x1b   :  { %p1497_p11 = scmp.ne.s32.totalorder %s32_s30, %s1496_s12  ;;  %p1502_p13 = scmp.lt.s32.totalorder %s1496_s12, %s1496_s12 }
  0x1d   :  { %p1503_p0 = por %p1502_p13, %p1501_p12 }
  0x1f   :  { %p1504_p1 = pnand %p1503_p0, %p1497_p11 }
  0x21   :  { %1507 = shalt.err (!%p1504_p1)
}
  0x22   :  { %s1540_s1 = smov 128   ;;  %s1541_s13 = smov 8  }
  0x23   :  { %37 = dma.hbm_to_vmem [thread:$0]  %s1920_s2, 1024, %s32_s30, [#allocation8], %s1540_s1, %s1540_s1, %s1541_s13  }
  0x24   :  { %1530 = dma.done.wait [#allocation5], 4096  }
  0x25   :  { %1531 = vsyncadd [#allocation5], 4294963200 }
  0x26   :  { %1532 = dma.done.wait [#allocation8], 1024  }
  0x27   :  { %1533 = vsyncadd [#allocation8], 4294966272  ;;  %v1542_v0 = vmov 0   ;;  %v47_v1 = vld [vmem:[%s1918_s0] sm:$0xff]  ;;  %v172_v2 = vld [vmem:[#allocation4 + $0x8] sm:$0xff]  ;;  %v1543_v17 = vmov 1   ;;  %v55_v63 = vlaneseq }
  0x28   :  { %1350 = vset.pattern.permute.xlu0 %v1542_v0  ;;  %418 = vmatprep.mubr.bf16.mxu1 %v1542_v0  ;;  %v1609_v3 = vld [vmem:[%s1918_s0 + $0x8] sm:$0xff]  ;;  %v174_v4 = vld [vmem:[#allocation4 + $0x18] sm:$0xff]  ;;  %v173_v6 = vld [vmem:[#allocation4 + $0x10] sm:$0xff]  ;;  %v98_v7 = vadd.s32 33, %v47_v1  ;;  %v1544_v27 = vmov 0.0   ;;  %s1546_s2 = smov 64  }
  0x29   :  { %1352 = vset.pattern.permute.xlu1 %v1542_v0  ;;  %58 = vperm.xlu0 %1350, %v47_v1   ;;  %v171_v5 = vld [vmem:[#allocation4] sm:$0xff]  ;;  %v1290_v8 = vpack.c.bf16 %v174_v4, %v172_v2  ;;  %v176_v10 = vld [vmem:[#allocation4 + $0x28] sm:$0xff]  ;;  %v178_v11 = vld [vmem:[#allocation4 + $0x38] sm:$0xff]  ;;  %v99_v21 = vadd.s32 33, %v1609_v3  ;;  %v1651_v1 = vand.u32 127, %v55_v63  ;;  %vm457_vm12 = vcmask 261120  }
  0x2a   :  { %v1292_v9 = vpack.c.bf16 %v173_v6, %v171_v5  ;;  %v175_v12 = vld [vmem:[#allocation4 + $0x20] sm:$0xff]  ;;  %v1294_v13 = vpack.c.bf16 %v178_v11, %v176_v10  ;;  %v177_v14 = vld [vmem:[#allocation4 + $0x30] sm:$0xff]  ;;  %v180_v15 = vld [vmem:[#allocation4 + $0x48] sm:$0xff]  ;;  %267 = vmatprep.mubr.f32.mxu0 %v1544_v27  ;;  %v1545_v5 = vmov 1.0   ;;  %vm459_vm13 = vcmask 523520   ;;  %s1547_s23 = smov [#allocation9]  }
  0x2b   :  { %v182_v16 = vld [vmem:[#allocation4 + $0x58] sm:$0xff]  ;;  %1291 = vmatprep.subr.bf16.mxu0 %v1290_v8  ;;  %v1296_v18 = vpack.c.bf16 %v177_v14, %v175_v12  ;;  %v179_v19 = vld [vmem:[#allocation4 + $0x40] sm:$0xff]  ;;  %v181_v20 = vld [vmem:[#allocation4 + $0x50] sm:$0xff]  ;;  %vm89_vm0 = vcmp.eq.s32.totalorder %v1651_v1, 32  ;;  %vm146_vm2 = vcmp.eq.s32.totalorder %v1651_v1, 65  ;;  %vm382_vm14 = vcmask 523264  }
  0x2c   :  { %1293 = vmatpush1.bf16.msra.mxu0 %v1292_v9  ;;  %v1298_v22 = vpack.c.bf16 %v182_v16, %v180_v15  ;;  %v1613_v23 = vld [vmem:[#allocation7 + $0x4] ss:$8 sps:$4 sm:$0xff]   ;;  %v186_v25 = vld [vmem:[#allocation4 + $0x78] sm:$0xff]  ;;  %v1615_v26 = vld [vmem:[#allocation7] ss:$8 sps:$4 sm:$0xff]   ;;  %v1300_v28 = vpack.c.bf16 %v181_v20, %v179_v19  ;;  %s1177_s24 = sshll.u32 %s1547_s23, 4  ;;  %s1178_s24 = int_to_ptr.vmem [resolvable:$true] %s1177_s24 }
  0x2d   :  { %1351 = vset.pattern.permute.xlu0 %v1543_v17  ;;  %1295 = vmatprep.subr.bf16.mxu0 %v1294_v13  ;;  %v184_v24 = vld [vmem:[#allocation4 + $0x68] sm:$0xff]  ;;  %v1620_v29 = vld [vmem:[#allocation7 + $0x14] ss:$8 sps:$4 sm:$0xff]   ;;  %v1622_v30 = vld [vmem:[#allocation7 + $0x10] ss:$8 sps:$4 sm:$0xff]   ;;  %p1513_p3 = scmp.lt.s32.totalorder %s1178_s24, %s1178_s24 }
  0x2e   :  { %107 = vperm.xlu0 %1351, %v98_v7   ;;  %386 = vmatprep.subr.bf16.mxu1 %v1613_v23  ;;  %v1302_v31 = vpack.c.bf16 %v186_v25, %v184_v24  ;;  %v183_v32 = vld [vmem:[#allocation4 + $0x60] sm:$0xff]  ;;  %v185_v33 = vld [vmem:[#allocation4 + $0x70] sm:$0xff]  ;;  %v188_v34 = vld [vmem:[#allocation4 + $0x88] sm:$0xff] }
  0x2f   :  { %387 = vmatpush1.bf16.msra.mxu1 %v1615_v26  ;;  %v190_v35 = vld [vmem:[#allocation4 + $0x98] sm:$0xff]  ;;  %v1625_v36 = vld [vmem:[#allocation7 + $0x24] ss:$8 sps:$4 sm:$0xff]   ;;  %v1304_v37 = vpack.c.bf16 %v185_v33, %v183_v32  ;;  %v189_v39 = vld [vmem:[#allocation4 + $0x90] sm:$0xff] }
  0x30   :  { %1297 = vmatpush1.bf16.msra.mxu0 %v1296_v18  ;;  %388 = vmatprep.subr.bf16.mxu1 %v1620_v29  ;;  %v187_v38 = vld [vmem:[#allocation4 + $0x80] sm:$0xff]  ;;  %v1306_v41 = vpack.c.bf16 %v190_v35, %v188_v34  ;;  %v1631_v42 = vld [vmem:[#allocation7 + $0x34] ss:$8 sps:$4 sm:$0xff]   ;;  %v192_v43 = vld [vmem:[#allocation4 + $0xa8] sm:$0xff] }
  0x31   :  { %1299 = vmatprep.subr.bf16.mxu0 %v1298_v22  ;;  %v1628_v40 = vld [vmem:[#allocation7 + $0x20] ss:$8 sps:$4 sm:$0xff]   ;;  %v194_v44 = vld [vmem:[#allocation4 + $0xb8] sm:$0xff]  ;;  %v1308_v45 = vpack.c.bf16 %v189_v39, %v187_v38  ;;  %v193_v49 = vld [vmem:[#allocation4 + $0xb0] sm:$0xff] }
  0x32   :  { %110 = vperm.xlu0 %1351, %v99_v21   ;;  %v1635_v46 = vld [vmem:[#allocation7 + $0x30] ss:$8 sps:$4 sm:$0xff]   ;;  %v1310_v47 = vpack.c.bf16 %v194_v44, %v192_v43  ;;  %v191_v48 = vld [vmem:[#allocation4 + $0xa0] sm:$0xff]  ;;  %v196_v50 = vld [vmem:[#allocation4 + $0xc8] sm:$0xff] }
  0x33   :  { %389 = vmatpush1.bf16.msra.mxu1 %v1622_v30  ;;  %v198_v51 = vld [vmem:[#allocation4 + $0xd8] sm:$0xff]  ;;  %v1312_v52 = vpack.c.bf16 %v193_v49, %v191_v48  ;;  %v195_v54 = vld [vmem:[#allocation4 + $0xc0] sm:$0xff]  ;;  %v197_v55 = vld [vmem:[#allocation4 + $0xd0] sm:$0xff] }
  0x34   :  { %1301 = vmatpush1.bf16.msra.mxu0 %v1300_v28  ;;  %390 = vmatprep.subr.bf16.mxu1 %v1625_v36  ;;  %v1314_v53 = vpack.c.bf16 %v198_v51, %v196_v50  ;;  %v200_v56 = vld [vmem:[#allocation4 + $0xe8] sm:$0xff]  ;;  %v202_v57 = vld [vmem:[#allocation4 + $0xf8] sm:$0xff]  ;;  %v1316_v58 = vpack.c.bf16 %v197_v55, %v195_v54  ;;  %v199_v60 = vld [vmem:[#allocation4 + $0xe0] sm:$0xff] }
  0x35   :  { %1303 = vmatprep.subr.bf16.mxu0 %v1302_v31  ;;  %v1318_v59 = vpack.c.bf16 %v202_v57, %v200_v56  ;;  %v201_v61 = vld [vmem:[#allocation4 + $0xf0] sm:$0xff] }
  0x36   :  { %1353 = vset.pattern.permute.xlu0 %v1542_v0  ;;  %v1320_v62 = vpack.c.bf16 %v201_v61, %v199_v60 }
  0x37   :  { %391 = vmatpush1.bf16.msra.mxu1 %v1628_v40 }
  0x38   :  { %1305 = vmatpush1.bf16.msra.mxu0 %v1304_v37  ;;  %392 = vmatprep.subr.bf16.mxu1 %v1631_v42 }
  0x39   :  { %1307 = vmatprep.subr.bf16.mxu0 %v1306_v41 }
  0x3b   :  { %393 = vmatpush1.bf16.msra.mxu1 %v1635_v46 }
  0x3c   :  { %1309 = vmatpush1.bf16.msra.mxu0 %v1308_v45  ;;  %467 = vmatprep.subr.bf16.mxu1 %v1613_v23 }
  0x3d   :  { %1311 = vmatprep.subr.bf16.mxu0 %v1310_v47 }
  0x3e   :  { %419 = vmatmul.mubr.bf16.vlgmr.msra.gmra.mrb[0].mxu1 %v1542_v0 }
  0x3f   :  { %468 = vmatpush1.bf16.msra.mxu1 %v1615_v26  ;;  %499 = vmatprep.mubr.bf16.mxu1 %v1542_v0 }
  0x40   :  { %1313 = vmatpush1.bf16.msra.mxu0 %v1312_v52  ;;  %469 = vmatprep.subr.bf16.mxu1 %v1620_v29  ;;  %v49_v52 = vld [vmem:[%s1918_s0 + $0x10] sm:$0xff] }
  0x41   :  { %1315 = vmatprep.subr.bf16.mxu0 %v1314_v53 }
  0x43   :  { %470 = vmatpush1.bf16.msra.mxu1 %v1622_v30 }
  0x44   :  { %1317 = vmatpush1.bf16.msra.mxu0 %v1316_v58  ;;  %471 = vmatprep.subr.bf16.mxu1 %v1625_v36 }
  0x45   :  { %1319 = vmatprep.subr.bf16.mxu0 %v1318_v59  ;;  %v100_v59 = vadd.s32 33, %v49_v52 }
  0x47   :  { %472 = vmatpush1.bf16.msra.mxu1 %v1628_v40 }
  0x48   :  { %1321 = vmatpush1.bf16.msra.mxu0 %v1320_v62  ;;  %473 = vmatprep.subr.bf16.mxu1 %v1631_v42 }
  0x49   :  { %625 = vmatprep.subr.bf16.mxu0 %v1613_v23 }
  0x4b   :  { %474 = vmatpush1.bf16.msra.mxu1 %v1635_v46 }
  0x4c   :  { %546 = vmatprep.subr.bf16.mxu1 %v1613_v23 }
  0xa8   :  { %v59_v2 = vpop.permute.xlu0 %58 }
  0xa9   :  { %vm81_vm1 = vcmp.eq.s32.totalorder %v1651_v1, %v59_v2 }
  0xaa   :  { %vm90_vm3 = vmor %vm81_vm1, %vm89_vm0 }
  0xad   :  { %v108_v4 = vpop.permute.xlu0 %107 }
  0xae   :  { %vm130_vm4 = vcmp.eq.s32.totalorder %v1651_v1, %v108_v4 }
  0xaf   :  { %vm138_vm5 = vmor %vm90_vm3, %vm130_vm4 }
  0xb0   :  { %vm147_vm6 = vmor %vm138_vm5, %vm146_vm2 }
  0xb1   :  { %1198 = vmatmul.mubr.msk.f32.vlgmr.msra.gmra.mrb[0].mxu0 %vm147_vm6, %v1545_v5  ;;  %v111_v31 = vpop.permute.xlu0 %110 }
  0xb2   :  { %273 = vmatprep.mubr.f32.mxu0 %v1544_v27  ;;  %626 = vmatpush1.bf16.msra.mxu0 %v1615_v26  ;;  %vm131_vm8 = vcmp.eq.s32.totalorder %v1651_v1, %v111_v31  ;;  %v53_v31 = vld [vmem:[%s1918_s0 + $0x30] sm:$0xff] }
  0xb3   :  { %627 = vmatprep.subr.bf16.mxu0 %v1620_v29 }
  0xb6   :  { %628 = vmatpush1.bf16.msra.mxu0 %v1622_v30 }
  0xb7   :  { %629 = vmatprep.subr.bf16.mxu0 %v1625_v36 }
  0xba   :  { %630 = vmatpush1.bf16.msra.mxu0 %v1628_v40 }
  0xbb   :  { %631 = vmatprep.subr.bf16.mxu0 %v1631_v42 }
  0xbe   :  { %632 = vmatpush1.bf16.msra.mxu0 %v1635_v46 }
  0xbf   :  { %783 = vmatprep.subr.bf16.mxu0 %v1613_v23 }
 0x111   :  { %v420_v6 = vpop.f32.mrb[0].mxu1 }
 0x112   :  { %v422_v7 = vpop.f32.mrb[1].mxu1 }
 0x113   :  { %v424_v8 = vpop.f32.mrb[2].mxu1 }
 0x114   :  { %v425_v9 = vpop.f32.mrb[3].mxu1 }
 0x184   :  { %v269_v10 = vpop.f32.mrb[0].mxu0 }
 0x185   :  { %v421_v11 = vadd.f32 %v420_v6, %v269_v10  ;;  %v271_v12 = vpop.f32.mrb[1].mxu0 }
 0x186   :  { %v423_v13 = vadd.f32 %v422_v7, %v271_v12 }
 0x187   :  { %v1214_v15 = vmul.f32 -1.442695, %v421_v11 }
 0x188   :  { %1368 = vtanh.f32 %v423_v13 }
 0x189   :  { %1370 = vpow2.f32 %v1214_v15 }
 0x192   :  { %v1369_v14 = vpop.eup %1368 }
 0x193   :  { %442 = vrot.lane.b32.xlu1 %v1369_v14, %s1546_s2  ;;  %v1371_v16 = vpop.eup %1370 }
 0x194   :  { %v433_v18 = vadd.f32 1.0, %v1371_v16 }
 0x196   :  { %1372 = vrcp.f32 %v433_v18 }
 0x1a0   :  { %v1373_v19 = vpop.eup %1372 }
 0x1a1   :  { %v440_v22 = vmul.f32 0.0, %v1373_v19 }
 0x205   :  { %v443_v20 = vpop.permute.xlu1 %442 }
 0x206   :  { %v445_v21 = vmul.f32 %v1373_v19, %v443_v20 }
 0x208   :  { %447 = vrot.lane.b32.xlu1 %v445_v21, %s1546_s2 }
 0x20c   :  { %61 = vperm.xlu1 %1352, %v1609_v3   ;;  %v1215_v3 = vmul.f32 -1.442695, %v423_v13 }
 0x210   :  { %1354 = vset.pattern.permute.xlu1 %v1543_v17 }
 0x27a   :  { %v448_v24 = vpop.permute.xlu1 %447 }
 0x27b   :  { %v450_v25 = vadd.f32 %v448_v24, %v440_v22  ;;  %v50_v24 = vld [vmem:[%s1918_s0 + $0x18] sm:$0xff] }
 0x27d   :  { %1374 = vtanh.f32 %v450_v25 }
 0x27e   :  { %1376 = vpow2.f32 %v1215_v3 }
 0x287   :  { %v1375_v28 = vpop.eup %1374 }
 0x288   :  { %453 = vrot.lane.b32.xlu1 %v1375_v28, %s1546_s2  ;;  %v1377_v33 = vpop.eup %1376  ;;  %v52_v28 = vld [vmem:[%s1918_s0 + $0x28] sm:$0xff] }
 0x289   :  { %v434_v34 = vadd.f32 1.0, %v1377_v33 }
 0x28b   :  { %v62_v32 = vpop.permute.xlu1 %61  ;;  %1378 = vrcp.f32 %v434_v34 }
 0x28c   :  { %vm82_vm7 = vcmp.eq.s32.totalorder %v1651_v1, %v62_v32  ;;  %v54_v32 = vld [vmem:[%s1918_s0 + $0x38] sm:$0xff] }
 0x28d   :  { %vm91_vm9 = vmor %vm82_vm7, %vm89_vm0 }
 0x28e   :  { %vm139_vm10 = vmor %vm91_vm9, %vm131_vm8 }
 0x28f   :  { %vm148_vm11 = vmor %vm139_vm10, %vm146_vm2 }
 0x290   :  { %1199 = vmatmul.mubr.msk.f32.gmra.mrb[2].mxu0 %vm148_vm11, %v1545_v5 }
 0x291   :  { %279 = vmatprep.mubr.f32.mxu0 %v1544_v27 }
 0x295   :  { %v1379_v35 = vpop.eup %1378 }
 0x2fa   :  { %v454_v37 = vpop.permute.xlu1 %453 }
 0x2fb   :  { %v456_v38 = vmul.f32 %v1379_v35, %v454_v37 }
 0x2fd   :  { %458 = vst.msk [vmem:[#allocation3] sm:$0xff] %vm457_vm12, %v456_v38  ;;  %v461_v39 = vpack.c.bf16 %v456_v38, %v456_v38 }
 0x2fe   :  { %460 = vst.msk [vmem:[#allocation3 + $0x38] sm:$0xff] %vm459_vm13, %v456_v38 }
 0x2ff   :  { %1216 = vmatmul.mubr.msk.bf16.vlgmr.msra.gmra.mrb[4].mxu1 %vm382_vm14, %v461_v39  ;;  %v101_v39 = vadd.s32 33, %v50_v24 }
 0x300   :  { %547 = vmatpush1.bf16.msra.mxu1 %v1615_v26  ;;  %578 = vmatprep.mubr.bf16.mxu1 %v1542_v0 }
 0x301   :  { %548 = vmatprep.subr.bf16.mxu1 %v1620_v29 }
 0x304   :  { %549 = vmatpush1.bf16.msra.mxu1 %v1622_v30 }
 0x305   :  { %550 = vmatprep.subr.bf16.mxu1 %v1625_v36 }
 0x308   :  { %551 = vmatpush1.bf16.msra.mxu1 %v1628_v40 }
 0x309   :  { %552 = vmatprep.subr.bf16.mxu1 %v1631_v42 }
 0x30c   :  { %553 = vmatpush1.bf16.msra.mxu1 %v1635_v46 }
 0x30d   :  { %704 = vmatprep.subr.bf16.mxu1 %v1613_v23 }
 0x363   :  { %v275_v41 = vpop.f32.mrb[2].mxu0 }
 0x364   :  { %v277_v43 = vpop.f32.mrb[3].mxu0 }
 0x3d2   :  { %v501_v44 = vpop.f32.mrb[4].mxu1 }
 0x3d3   :  { %v502_v45 = vadd.f32 %v501_v44, %v275_v41  ;;  %v503_v47 = vpop.f32.mrb[5].mxu1  ;;  %v104_v44 = vadd.s32 33, %v53_v31 }
 0x3d4   :  { %v504_v48 = vadd.f32 %v503_v47, %v277_v43  ;;  %v505_v49 = vpop.f32.mrb[6].mxu1  ;;  %v103_v43 = vadd.s32 33, %v52_v28 }
 0x3d5   :  { %v506_v50 = vpop.f32.mrb[7].mxu1  ;;  %v1217_v53 = vmul.f32 -1.442695, %v502_v45  ;;  %v105_v45 = vadd.s32 33, %v54_v32 }
 0x3d6   :  { %1380 = vtanh.f32 %v504_v48  ;;  %v1218_v6 = vmul.f32 -1.442695, %v504_v48 }
 0x3d7   :  { %1382 = vpow2.f32 %v1217_v53 }
 0x3e0   :  { %v1381_v51 = vpop.eup %1380 }
 0x3e1   :  { %523 = vrot.lane.b32.xlu0 %v1381_v51, %s1546_s2  ;;  %v1383_v54 = vpop.eup %1382 }
 0x3e2   :  { %v514_v55 = vadd.f32 1.0, %v1383_v54 }
 0x3e4   :  { %1384 = vrcp.f32 %v514_v55 }
 0x3e5   :  { %64 = vperm.xlu0 %1353, %v49_v52  }
 0x3ee   :  { %v1385_v56 = vpop.eup %1384 }
 0x3ef   :  { %v521_v60 = vmul.f32 %v1385_v56, %v450_v25  ;;  %v51_v25 = vld [vmem:[%s1918_s0 + $0x20] sm:$0xff] }
 0x3f0   :  { %v102_v41 = vadd.s32 33, %v51_v25 }
 0x453   :  { %v524_v57 = vpop.permute.xlu0 %523 }
 0x454   :  { %v526_v58 = vmul.f32 %v1385_v56, %v524_v57 }
 0x456   :  { %528 = vrot.lane.b32.xlu1 %v526_v58, %s1546_s2 }
 0x45a   :  { %113 = vperm.xlu1 %1354, %v100_v59  }
 0x464   :  { %v65_v63 = vpop.permute.xlu0 %64 }
 0x465   :  { %vm83_vm15 = vcmp.eq.s32.totalorder %v1651_v1, %v65_v63 }
 0x466   :  { %vm92_vm1 = vmor %vm83_vm15, %vm89_vm0 }
 0x4c8   :  { %v529_v61 = vpop.permute.xlu1 %528 }
 0x4c9   :  { %v1701_v62 = vadd.f32 %v529_v61, %v521_v60 }
 0x4cb   :  { %1386 = vtanh.f32 %v1701_v62 }
 0x4cc   :  { %1388 = vpow2.f32 %v1218_v6 }
 0x4d5   :  { %v1387_v2 = vpop.eup %1386 }
 0x4d6   :  { %534 = vrot.lane.b32.xlu1 %v1387_v2, %s1546_s2  ;;  %v1389_v7 = vpop.eup %1388 }
 0x4d7   :  { %v515_v8 = vadd.f32 1.0, %v1389_v7 }
 0x4d9   :  { %v114_v4 = vpop.permute.xlu1 %113  ;;  %1390 = vrcp.f32 %v515_v8 }
 0x4da   :  { %vm132_vm3 = vcmp.eq.s32.totalorder %v1651_v1, %v114_v4 }
 0x4db   :  { %vm140_vm4 = vmor %vm92_vm1, %vm132_vm3 }
 0x4dc   :  { %vm149_vm5 = vmor %vm140_vm4, %vm146_vm2 }
 0x4dd   :  { %1200 = vmatmul.mubr.msk.f32.gmra.mrb[4].mxu0 %vm149_vm5, %v1545_v5 }
 0x4de   :  { %285 = vmatprep.mubr.f32.mxu0 %v1544_v27 }
 0x4e3   :  { %v1391_v9 = vpop.eup %1390 }
 0x548   :  { %v535_v10 = vpop.permute.xlu1 %534 }
 0x549   :  { %v537_v11 = vmul.f32 %v1391_v9, %v535_v10 }
 0x54b   :  { %538 = vst.msk [vmem:[#allocation3 + $0x8] sm:$0xff] %vm457_vm12, %v537_v11  ;;  %v540_v12 = vpack.c.bf16 %v537_v11, %v537_v11 }
 0x54c   :  { %539 = vst.msk [vmem:[#allocation3 + $0x30] sm:$0xff] %vm459_vm13, %v537_v11 }
 0x54d   :  { %1219 = vmatmul.mubr.msk.bf16.vlgmr.msra.gmra.mrb[8].mxu1 %vm382_vm14, %v540_v12 }
 0x54e   :  { %705 = vmatpush1.bf16.msra.mxu1 %v1615_v26  ;;  %736 = vmatprep.mubr.bf16.mxu1 %v1542_v0 }
 0x54f   :  { %706 = vmatprep.subr.bf16.mxu1 %v1620_v29 }
 0x552   :  { %707 = vmatpush1.bf16.msra.mxu1 %v1622_v30 }
 0x553   :  { %708 = vmatprep.subr.bf16.mxu1 %v1625_v36 }
 0x556   :  { %709 = vmatpush1.bf16.msra.mxu1 %v1628_v40 }
 0x557   :  { %710 = vmatprep.subr.bf16.mxu1 %v1631_v42 }
 0x55a   :  { %711 = vmatpush1.bf16.msra.mxu1 %v1635_v46 }
 0x55b   :  { %862 = vmatprep.subr.bf16.mxu1 %v1613_v23 }
 0x5b0   :  { %v281_v13 = vpop.f32.mrb[4].mxu0 }
 0x5b1   :  { %v283_v14 = vpop.f32.mrb[5].mxu0 }
 0x620   :  { %v580_v15 = vpop.f32.mrb[8].mxu1 }
 0x621   :  { %v581_v16 = vadd.f32 %v580_v15, %v281_v13  ;;  %v582_v18 = vpop.f32.mrb[9].mxu1 }
 0x622   :  { %v1725_v19 = vadd.f32 %v582_v18, %v283_v14  ;;  %v584_v20 = vpop.f32.mrb[10].mxu1 }
 0x623   :  { %v585_v21 = vpop.f32.mrb[11].mxu1  ;;  %v1220_v3 = vmul.f32 -1.442695, %v581_v16 }
 0x624   :  { %1392 = vtanh.f32 %v1725_v19  ;;  %v1221_v60 = vmul.f32 -1.442695, %v1725_v19 }
 0x625   :  { %1394 = vpow2.f32 %v1220_v3 }
 0x62e   :  { %v1393_v22 = vpop.eup %1392 }
 0x62f   :  { %602 = vrot.lane.b32.xlu0 %v1393_v22, %s1546_s2  ;;  %v1395_v33 = vpop.eup %1394 }
 0x630   :  { %v593_v34 = vadd.f32 1.0, %v1395_v33 }
 0x632   :  { %1396 = vrcp.f32 %v593_v34 }
 0x633   :  { %67 = vperm.xlu0 %1353, %v50_v24  }
 0x637   :  { %70 = vperm.xlu0 %1353, %v51_v25  }
 0x63b   :  { %73 = vperm.xlu0 %1353, %v52_v28  }
 0x63c   :  { %v1397_v35 = vpop.eup %1396 }
 0x63f   :  { %76 = vperm.xlu0 %1353, %v53_v31  }
 0x643   :  { %79 = vperm.xlu0 %1353, %v54_v32  }
 0x647   :  { %1355 = vset.pattern.permute.xlu0 %v1543_v17  ;;  %v600_v17 = vmul.f32 %v1397_v35, %v1701_v62 }
 0x6a1   :  { %v603_v37 = vpop.permute.xlu0 %602 }
 0x6a2   :  { %v605_v38 = vmul.f32 %v1397_v35, %v603_v37 }
 0x6a4   :  { %607 = vrot.lane.b32.xlu1 %v605_v38, %s1546_s2 }
 0x6a8   :  { %116 = vperm.xlu1 %1354, %v101_v39  }
 0x6ac   :  { %119 = vperm.xlu1 %1354, %v102_v41  }
 0x6b0   :  { %122 = vperm.xlu1 %1354, %v103_v43  }
 0x6b2   :  { %v68_v49 = vpop.permute.xlu0 %67 }
 0x6b3   :  { %vm84_vm6 = vcmp.eq.s32.totalorder %v1651_v1, %v68_v49 }
 0x6b4   :  { %125 = vperm.xlu1 %1354, %v104_v44   ;;  %vm93_vm7 = vmor %vm84_vm6, %vm89_vm0 }
 0x6b6   :  { %v71_v50 = vpop.permute.xlu0 %70 }
 0x6b7   :  { %vm85_vm9 = vcmp.eq.s32.totalorder %v1651_v1, %v71_v50 }
 0x6b8   :  { %128 = vperm.xlu1 %1354, %v105_v45   ;;  %vm94_vm15 = vmor %vm85_vm9, %vm89_vm0 }
 0x6ba   :  { %v74_v52 = vpop.permute.xlu0 %73 }
 0x6bb   :  { %vm86_vm3 = vcmp.eq.s32.totalorder %v1651_v1, %v74_v52 }
 0x6bc   :  { %vm95_vm6 = vmor %vm86_vm3, %vm89_vm0 }
 0x6be   :  { %v77_v55 = vpop.permute.xlu0 %76 }
 0x6c2   :  { %v80_v57 = vpop.permute.xlu0 %79 }
 0x716   :  { %v608_v47 = vpop.permute.xlu1 %607 }
 0x717   :  { %v1747_v48 = vadd.f32 %v608_v47, %v600_v17 }
 0x719   :  { %1398 = vtanh.f32 %v1747_v48 }
 0x71a   :  { %1400 = vpow2.f32 %v1221_v60 }
 0x723   :  { %v1399_v51 = vpop.eup %1398 }
 0x724   :  { %613 = vrot.lane.b32.xlu0 %v1399_v51, %s1546_s2  ;;  %v1401_v61 = vpop.eup %1400 }
 0x725   :  { %v594_v62 = vadd.f32 1.0, %v1401_v61 }
 0x727   :  { %v117_v53 = vpop.permute.xlu1 %116  ;;  %1402 = vrcp.f32 %v594_v62 }
 0x728   :  { %vm133_vm8 = vcmp.eq.s32.totalorder %v1651_v1, %v117_v53 }
 0x729   :  { %vm141_vm10 = vmor %vm93_vm7, %vm133_vm8  ;;  %vm87_vm8 = vcmp.eq.s32.totalorder %v1651_v1, %v77_v55 }
 0x72a   :  { %vm150_vm11 = vmor %vm141_vm10, %vm146_vm2 }
 0x72b   :  { %1201 = vmatmul.mubr.msk.f32.gmra.mrb[6].mxu0 %vm150_vm11, %v1545_v5  ;;  %v120_v54 = vpop.permute.xlu1 %119  ;;  %vm96_vm11 = vmor %vm87_vm8, %vm89_vm0 }
 0x72c   :  { %vm134_vm1 = vcmp.eq.s32.totalorder %v1651_v1, %v120_v54  ;;  %291 = vmatprep.mubr.f32.mxu0 %v1544_v27 }
 0x72d   :  { %vm142_vm4 = vmor %vm94_vm15, %vm134_vm1  ;;  %vm88_vm1 = vcmp.eq.s32.totalorder %v1651_v1, %v80_v57 }
 0x72e   :  { %vm151_vm5 = vmor %vm142_vm4, %vm146_vm2 }
 0x72f   :  { %1202 = vmatmul.mubr.msk.f32.gmra.mrb[8].mxu0 %vm151_vm5, %v1545_v5  ;;  %v123_v56 = vpop.permute.xlu1 %122  ;;  %vm97_vm5 = vmor %vm88_vm1, %vm89_vm0 }
 0x730   :  { %vm135_vm7 = vcmp.eq.s32.totalorder %v1651_v1, %v123_v56  ;;  %297 = vmatprep.mubr.f32.mxu0 %v1544_v27 }
 0x731   :  { %vm143_vm9 = vmor %vm95_vm6, %vm135_vm7  ;;  %v1403_v63 = vpop.eup %1402 }
 0x732   :  { %vm152_vm10 = vmor %vm143_vm9, %vm146_vm2 }
 0x733   :  { %1203 = vmatmul.mubr.msk.f32.gmra.mrb[10].mxu0 %vm152_vm10, %v1545_v5  ;;  %v126_v58 = vpop.permute.xlu1 %125 }
 0x734   :  { %vm136_vm15 = vcmp.eq.s32.totalorder %v1651_v1, %v126_v58  ;;  %303 = vmatprep.mubr.f32.mxu0 %v1544_v27 }
 0x735   :  { %vm144_vm3 = vmor %vm96_vm11, %vm136_vm15 }
 0x736   :  { %vm153_vm4 = vmor %vm144_vm3, %vm146_vm2 }
 0x737   :  { %1204 = vmatmul.mubr.msk.f32.gmra.mrb[12].mxu0 %vm153_vm4, %v1545_v5  ;;  %v129_v59 = vpop.permute.xlu1 %128 }
 0x738   :  { %vm137_vm6 = vcmp.eq.s32.totalorder %v1651_v1, %v129_v59  ;;  %309 = vmatprep.mubr.f32.mxu0 %v1544_v27 }
 0x739   :  { %vm145_vm7 = vmor %vm97_vm5, %vm137_vm6 }
 0x73a   :  { %vm154_vm8 = vmor %vm145_vm7, %vm146_vm2 }
 0x73b   :  { %1205 = vmatmul.mubr.msk.f32.gmra.mrb[14].mxu0 %vm154_vm8, %v1545_v5 }
 0x73c   :  { %657 = vmatprep.mubr.bf16.mxu0 %v1542_v0 }
 0x796   :  { %v614_v2 = vpop.permute.xlu0 %613 }
 0x797   :  { %v616_v4 = vmul.f32 %v1403_v63, %v614_v2 }
 0x799   :  { %617 = vst.msk [vmem:[#allocation3 + $0x10] sm:$0xff] %vm457_vm12, %v616_v4  ;;  %v619_v27 = vpack.c.bf16 %v616_v4, %v616_v4 }
 0x79a   :  { %618 = vst.msk [vmem:[#allocation3 + $0x28] sm:$0xff] %vm459_vm13, %v616_v4 }
 0x79b   :  { %1222 = vmatmul.mubr.msk.bf16.vlgmr.msra.gmra.mrb[16].mxu0 %vm382_vm14, %v619_v27 }
 0x79c   :  { %784 = vmatpush1.bf16.msra.mxu0 %v1615_v26  ;;  %815 = vmatprep.mubr.bf16.mxu0 %v1542_v0 }
 0x79d   :  { %785 = vmatprep.subr.bf16.mxu0 %v1620_v29 }
 0x7a0   :  { %786 = vmatpush1.bf16.msra.mxu0 %v1622_v30 }
 0x7a1   :  { %787 = vmatprep.subr.bf16.mxu0 %v1625_v36 }
 0x7a4   :  { %788 = vmatpush1.bf16.msra.mxu0 %v1628_v40 }
 0x7a5   :  { %789 = vmatprep.subr.bf16.mxu0 %v1631_v42 }
 0x7a8   :  { %790 = vmatpush1.bf16.msra.mxu0 %v1635_v46 }
 0x7a9   :  { %941 = vmatprep.subr.bf16.mxu0 %v1613_v23 }
 0x7fe   :  { %v287_v1 = vpop.f32.mrb[6].mxu0 }
 0x7ff   :  { %v289_v5 = vpop.f32.mrb[7].mxu0 }
 0x802   :  { %v293_v6 = vpop.f32.mrb[8].mxu0 }
 0x803   :  { %v295_v7 = vpop.f32.mrb[9].mxu0 }
 0x806   :  { %v1804_v8 = vpop.f32.mrb[10].mxu0 }
 0x807   :  { %v1806_v9 = vpop.f32.mrb[11].mxu0 }
 0x80a   :  { %v1808_v10 = vpop.f32.mrb[12].mxu0 }
 0x80b   :  { %v1810_v11 = vpop.f32.mrb[13].mxu0 }
 0x80e   :  { %v1812_v12 = vpop.f32.mrb[14].mxu0 }
 0x80f   :  { %v1814_v13 = vpop.f32.mrb[15].mxu0 }
 0x86e   :  { %v659_v14 = vpop.f32.mrb[16].mxu0 }
 0x86f   :  { %v660_v15 = vadd.f32 %v659_v14, %v287_v1  ;;  %v661_v16 = vpop.f32.mrb[17].mxu0 }
 0x870   :  { %v662_v23 = vadd.f32 %v661_v16, %v289_v5  ;;  %v663_v18 = vpop.f32.mrb[18].mxu0 }
 0x871   :  { %v664_v19 = vpop.f32.mrb[19].mxu0  ;;  %v1223_v21 = vmul.f32 -1.442695, %v660_v15 }
 0x872   :  { %1404 = vtanh.f32 %v662_v23  ;;  %v1224_v35 = vmul.f32 -1.442695, %v662_v23 }
 0x873   :  { %1406 = vpow2.f32 %v1223_v21 }
 0x87c   :  { %v1405_v20 = vpop.eup %1404 }
 0x87d   :  { %681 = vrot.lane.b32.xlu1 %v1405_v20, %s1546_s2  ;;  %v1407_v22 = vpop.eup %1406 }
 0x87e   :  { %v672_v24 = vadd.f32 1.0, %v1407_v22 }
 0x880   :  { %1408 = vrcp.f32 %v672_v24 }
 0x88a   :  { %v1409_v25 = vpop.eup %1408 }
 0x88b   :  { %v679_v32 = vmul.f32 %v1409_v25, %v1747_v48 }
 0x8ef   :  { %v682_v28 = vpop.permute.xlu1 %681 }
 0x8f0   :  { %v684_v31 = vmul.f32 %v1409_v25, %v682_v28 }
 0x8f2   :  { %686 = vrot.lane.b32.xlu0 %v684_v31, %s1546_s2 }
 0x964   :  { %v687_v3 = vpop.permute.xlu0 %686 }
 0x965   :  { %v689_v33 = vadd.f32 %v687_v3, %v679_v32 }
 0x967   :  { %1410 = vtanh.f32 %v689_v33 }
 0x968   :  { %1412 = vpow2.f32 %v1224_v35 }
 0x971   :  { %v1411_v34 = vpop.eup %1410 }
 0x972   :  { %692 = vrot.lane.b32.xlu1 %v1411_v34, %s1546_s2  ;;  %v1413_v37 = vpop.eup %1412 }
 0x973   :  { %v673_v38 = vadd.f32 1.0, %v1413_v37 }
 0x975   :  { %1414 = vrcp.f32 %v673_v38 }
 0x97f   :  { %v1415_v39 = vpop.eup %1414 }
 0x9e4   :  { %v693_v41 = vpop.permute.xlu1 %692 }
 0x9e5   :  { %v695_v43 = vmul.f32 %v1415_v39, %v693_v41 }
 0x9e7   :  { %696 = vst.msk [vmem:[#allocation3 + $0x18] sm:$0xff] %vm457_vm12, %v695_v43  ;;  %v698_v44 = vpack.c.bf16 %v695_v43, %v695_v43 }
 0x9e8   :  { %697 = vst.msk [vmem:[#allocation3 + $0x20] sm:$0xff] %vm459_vm13, %v695_v43 }
 0x9e9   :  { %1225 = vmatmul.mubr.msk.bf16.vlgmr.msra.gmra.mrb[12].mxu1 %vm382_vm14, %v698_v44 }
 0x9ea   :  { %863 = vmatpush1.bf16.msra.mxu1 %v1615_v26  ;;  %894 = vmatprep.mubr.bf16.mxu1 %v1542_v0 }
 0x9eb   :  { %864 = vmatprep.subr.bf16.mxu1 %v1620_v29 }
 0x9ee   :  { %865 = vmatpush1.bf16.msra.mxu1 %v1622_v30 }
 0x9ef   :  { %866 = vmatprep.subr.bf16.mxu1 %v1625_v36 }
 0x9f2   :  { %867 = vmatpush1.bf16.msra.mxu1 %v1628_v40 }
 0x9f3   :  { %868 = vmatprep.subr.bf16.mxu1 %v1631_v42 }
 0x9f6   :  { %869 = vmatpush1.bf16.msra.mxu1 %v1635_v46 }
 0xabc   :  { %v738_v45 = vpop.f32.mrb[12].mxu1 }
 0xabd   :  { %v739_v17 = vadd.f32 %v738_v45, %v293_v6  ;;  %v740_v47 = vpop.f32.mrb[13].mxu1 }
 0xabe   :  { %v741_v48 = vadd.f32 %v740_v47, %v295_v7  ;;  %v742_v49 = vpop.f32.mrb[14].mxu1 }
 0xabf   :  { %v743_v50 = vpop.f32.mrb[15].mxu1  ;;  %v1226_v52 = vmul.f32 -1.442695, %v739_v17 }
 0xac0   :  { %1416 = vtanh.f32 %v741_v48  ;;  %v1227_v62 = vmul.f32 -1.442695, %v741_v48 }
 0xac1   :  { %1418 = vpow2.f32 %v1226_v52 }
 0xaca   :  { %v1417_v51 = vpop.eup %1416 }
 0xacb   :  { %760 = vrot.lane.b32.xlu0 %v1417_v51, %s1546_s2  ;;  %v1419_v53 = vpop.eup %1418 }
 0xacc   :  { %v751_v54 = vadd.f32 1.0, %v1419_v53 }
 0xace   :  { %1420 = vrcp.f32 %v751_v54 }
 0xad8   :  { %v1421_v55 = vpop.eup %1420 }
 0xad9   :  { %v758_v58 = vmul.f32 %v1421_v55, %v689_v33 }
 0xb3d   :  { %v761_v56 = vpop.permute.xlu0 %760 }
 0xb3e   :  { %v763_v57 = vmul.f32 %v1421_v55, %v761_v56 }
 0xb40   :  { %765 = vrot.lane.b32.xlu1 %v763_v57, %s1546_s2 }
 0xbb2   :  { %v766_v59 = vpop.permute.xlu1 %765 }
 0xbb3   :  { %v768_v60 = vadd.f32 %v766_v59, %v758_v58 }
 0xbb5   :  { %1422 = vtanh.f32 %v768_v60 }
 0xbb6   :  { %1424 = vpow2.f32 %v1227_v62 }
 0xbbf   :  { %v1423_v61 = vpop.eup %1422 }
 0xbc0   :  { %771 = vrot.lane.b32.xlu0 %v1423_v61, %s1546_s2  ;;  %v1425_v63 = vpop.eup %1424 }
 0xbc1   :  { %v752_v2 = vadd.f32 1.0, %v1425_v63 }
 0xbc3   :  { %1426 = vrcp.f32 %v752_v2 }
 0xbcd   :  { %v1427_v4 = vpop.eup %1426 }
 0xc32   :  { %v772_v27 = vpop.permute.xlu0 %771 }
 0xc33   :  { %v774_v1 = vmul.f32 %v1427_v4, %v772_v27 }
 0xc35   :  { %775 = vst.msk [vmem:[#allocation3 + $0x20] sm:$0xff] %vm457_vm12, %v774_v1  ;;  %v777_v5 = vpack.c.bf16 %v774_v1, %v774_v1 }
 0xc36   :  { %776 = vst.msk [vmem:[#allocation3 + $0x18] sm:$0xff] %vm459_vm13, %v774_v1 }
 0xc37   :  { %1228 = vmatmul.mubr.msk.bf16.vlgmr.msra.gmra.mrb[20].mxu0 %vm382_vm14, %v777_v5  ;;  %v1024_v5 = vld [vmem:[%s1921_s3 + $0x10] sm:$0xff] }
 0xc38   :  { %942 = vmatpush1.bf16.msra.mxu0 %v1615_v26  ;;  %973 = vmatprep.mubr.bf16.mxu0 %v1542_v0 }
 0xc39   :  { %943 = vmatprep.subr.bf16.mxu0 %v1620_v29 }
 0xc3c   :  { %944 = vmatpush1.bf16.msra.mxu0 %v1622_v30 }
 0xc3d   :  { %945 = vmatprep.subr.bf16.mxu0 %v1625_v36 }
 0xc40   :  { %946 = vmatpush1.bf16.msra.mxu0 %v1628_v40 }
 0xc41   :  { %947 = vmatprep.subr.bf16.mxu0 %v1631_v42 }
 0xc44   :  { %948 = vmatpush1.bf16.msra.mxu0 %v1635_v46 }
 0xd0a   :  { %v817_v6 = vpop.f32.mrb[20].mxu0 }
 0xd0b   :  { %v818_v7 = vadd.f32 %v817_v6, %v1804_v8  ;;  %v819_v14 = vpop.f32.mrb[21].mxu0 }
 0xd0c   :  { %v820_v26 = vadd.f32 %v819_v14, %v1806_v9  ;;  %v821_v15 = vpop.f32.mrb[22].mxu0 }
 0xd0d   :  { %v822_v0 = vpop.f32.mrb[23].mxu0  ;;  %v1229_v30 = vmul.f32 -1.442695, %v818_v7  ;;  %v1025_v7 = vld [vmem:[%s1921_s3 + $0x18] sm:$0xff] }
 0xd0e   :  { %1428 = vtanh.f32 %v820_v26  ;;  %v1230_v19 = vmul.f32 -1.442695, %v820_v26  ;;  %v1326_v14 = vpack.c.bf16 %v1025_v7, %v1024_v5 }
 0xd0f   :  { %1430 = vpow2.f32 %v1229_v30  ;;  %v1027_v30 = vld [vmem:[%s1921_s3 + $0x28] sm:$0xff] }
 0xd18   :  { %v1429_v29 = vpop.eup %1428 }
 0xd19   :  { %839 = vrot.lane.b32.xlu1 %v1429_v29, %s1546_s2  ;;  %v1431_v36 = vpop.eup %1430  ;;  %v1026_v29 = vld [vmem:[%s1921_s3 + $0x20] sm:$0xff] }
 0xd1a   :  { %v830_v40 = vadd.f32 1.0, %v1431_v36  ;;  %v1330_v36 = vpack.c.bf16 %v1027_v30, %v1026_v29 }
 0xd1c   :  { %1432 = vrcp.f32 %v830_v40  ;;  %v1028_v40 = vld [vmem:[%s1921_s3 + $0x30] sm:$0xff] }
 0xd26   :  { %v1433_v42 = vpop.eup %1432 }
 0xd27   :  { %v837_v8 = vmul.f32 %v1433_v42, %v768_v60 }
 0xd8b   :  { %v840_v16 = vpop.permute.xlu1 %839 }
 0xd8c   :  { %v842_v46 = vmul.f32 %v1433_v42, %v840_v16  ;;  %v1029_v42 = vld [vmem:[%s1921_s3 + $0x38] sm:$0xff] }
 0xd8d   :  { %v1334_v16 = vpack.c.bf16 %v1029_v42, %v1028_v40 }
 0xd8e   :  { %844 = vrot.lane.b32.xlu0 %v842_v46, %s1546_s2 }
 0xe00   :  { %v845_v23 = vpop.permute.xlu0 %844 }
 0xe01   :  { %v847_v18 = vadd.f32 %v845_v23, %v837_v8 }
 0xe03   :  { %1434 = vtanh.f32 %v847_v18 }
 0xe04   :  { %1436 = vpow2.f32 %v1230_v19 }
 0xe0d   :  { %v1435_v9 = vpop.eup %1434 }
 0xe0e   :  { %850 = vrot.lane.b32.xlu1 %v1435_v9, %s1546_s2  ;;  %v1437_v20 = vpop.eup %1436 }
 0xe0f   :  { %v831_v21 = vadd.f32 1.0, %v1437_v20 }
 0xe11   :  { %1438 = vrcp.f32 %v831_v21 }
 0xe1b   :  { %v1439_v22 = vpop.eup %1438 }
 0xe80   :  { %v851_v24 = vpop.permute.xlu1 %850 }
 0xe81   :  { %v853_v25 = vmul.f32 %v1439_v22, %v851_v24 }
 0xe83   :  { %854 = vst.msk [vmem:[#allocation3 + $0x28] sm:$0xff] %vm457_vm12, %v853_v25  ;;  %v856_v28 = vpack.c.bf16 %v853_v25, %v853_v25 }
 0xe84   :  { %855 = vst.msk [vmem:[#allocation3 + $0x10] sm:$0xff] %vm459_vm13, %v853_v25  ;;  %v1017_v25 = vld [vmem:[#allocation3 + $0x18] sm:$0xff] }
 0xe85   :  { %1231 = vmatmul.mubr.msk.bf16.vlgmr.msra.gmra.mrb[16].mxu1 %vm382_vm14, %v856_v28  ;;  %v1018_v28 = vld [vmem:[#allocation3 + $0x20] sm:$0xff] }
 0xe8b   :  { %v1016_v24 = vld [vmem:[#allocation3 + $0x10] sm:$0xff] }
 0xf58   :  { %v896_v31 = vpop.f32.mrb[16].mxu1 }
 0xf59   :  { %v897_v32 = vadd.f32 %v896_v31, %v1808_v10  ;;  %v898_v3 = vpop.f32.mrb[17].mxu1  ;;  %v1019_v31 = vld [vmem:[#allocation3 + $0x28] sm:$0xff] }
 0xf5a   :  { %v899_v33 = vadd.f32 %v898_v3, %v1810_v11  ;;  %v900_v34 = vpop.f32.mrb[18].mxu1 }
 0xf5b   :  { %v901_v35 = vpop.f32.mrb[19].mxu1  ;;  %v1232_v38 = vmul.f32 -1.442695, %v897_v32 }
 0xf5c   :  { %1440 = vtanh.f32 %v899_v33  ;;  %v1233_v48 = vmul.f32 -1.442695, %v899_v33  ;;  %v1237_v33 = vld [vmem:[%s1921_s3 + $0x40] ss:$0 sm:$0xff] }
 0xf5d   :  { %1442 = vpow2.f32 %v1232_v38 }
 0xf66   :  { %v1441_v37 = vpop.eup %1440 }
 0xf67   :  { %918 = vrot.lane.b32.xlu0 %v1441_v37, %s1546_s2  ;;  %v1443_v39 = vpop.eup %1442 }
 0xf68   :  { %v909_v41 = vadd.f32 1.0, %v1443_v39 }
 0xf6a   :  { %1444 = vrcp.f32 %v909_v41 }
 0xf74   :  { %v1445_v43 = vpop.eup %1444 }
 0xf75   :  { %v916_v10 = vmul.f32 %v1445_v43, %v847_v18 }
 0xfd9   :  { %v919_v44 = vpop.permute.xlu0 %918 }
 0xfda   :  { %v921_v45 = vmul.f32 %v1445_v43, %v919_v44 }
 0xfdc   :  { %923 = vrot.lane.b32.xlu1 %v921_v45, %s1546_s2 }
0x104e   :  { %v924_v17 = vpop.permute.xlu1 %923 }
0x104f   :  { %v926_v47 = vadd.f32 %v924_v17, %v916_v10 }
0x1051   :  { %1446 = vtanh.f32 %v926_v47 }
0x1052   :  { %1448 = vpow2.f32 %v1233_v48 }
0x105b   :  { %v1447_v11 = vpop.eup %1446 }
0x105c   :  { %929 = vrot.lane.b32.xlu0 %v1447_v11, %s1546_s2  ;;  %v1449_v49 = vpop.eup %1448 }
0x105d   :  { %v910_v50 = vadd.f32 1.0, %v1449_v49 }
0x105f   :  { %1450 = vrcp.f32 %v910_v50 }
0x1069   :  { %v1451_v51 = vpop.eup %1450 }
0x10ce   :  { %v930_v52 = vpop.permute.xlu0 %929 }
0x10cf   :  { %v932_v53 = vmul.f32 %v1451_v51, %v930_v52 }
0x10d1   :  { %933 = vst.msk [vmem:[#allocation3 + $0x30] sm:$0xff] %vm457_vm12, %v932_v53  ;;  %v935_v54 = vpack.c.bf16 %v932_v53, %v932_v53 }
0x10d2   :  { %934 = vst.msk [vmem:[#allocation3 + $0x8] sm:$0xff] %vm459_vm13, %v932_v53 }
0x10d3   :  { %1234 = vmatmul.mubr.msk.bf16.vlgmr.msra.gmra.mrb[24].mxu0 %vm382_vm14, %v935_v54 }
0x10d8   :  { %v1020_v32 = vld [vmem:[#allocation3 + $0x30] sm:$0xff] }
0x10d9   :  { %v1015_v22 = vld [vmem:[#allocation3 + $0x8] sm:$0xff] }
0x11a6   :  { %v975_v55 = vpop.f32.mrb[24].mxu0 }
0x11a7   :  { %v976_v56 = vadd.f32 %v975_v55, %v1812_v12  ;;  %v977_v57 = vpop.f32.mrb[25].mxu0  ;;  %v1022_v12 = vld [vmem:[%s1921_s3] sm:$0xff] }
0x11a8   :  { %v978_v58 = vadd.f32 %v977_v57, %v1814_v13  ;;  %v979_v59 = vpop.f32.mrb[26].mxu0  ;;  %v1023_v13 = vld [vmem:[%s1921_s3 + $0x8] sm:$0xff]  ;;  %s1508_s3 = scalar_lea.vmem %s1178_s24, 1024 }
0x11a9   :  { %v980_v60 = vpop.f32.mrb[27].mxu0  ;;  %v1235_v62 = vmul.f32 -1.442695, %v976_v56  ;;  %v1322_v6 = vpack.c.bf16 %v1023_v13, %v1022_v12  ;;  %p1509_p2 = scmp.ne.s32.totalorder %s1178_s24, %s1508_s3  ;;  %p1514_p4 = scmp.lt.s32.totalorder %s1508_s3, %s1508_s3 }
0x11aa   :  { %1452 = vtanh.f32 %v978_v58  ;;  %v1236_v8 = vmul.f32 -1.442695, %v978_v58 }
0x11ab   :  { %1454 = vpow2.f32 %v1235_v62  ;;  %1323 = vmatprep.subr.bf16.mxu1 %v1322_v6  ;;  %p1515_p5 = por %p1514_p4, %p1513_p3 }
0x11ac   :  { %1325 = vmatpush3.bf16.msra.mxu1 %v1322_v6 }
0x11ad   :  { %1327 = vmatprep.subr.bf16.mxu1 %v1326_v14  ;;  %p1516_p6 = pnand %p1515_p5, %p1509_p2 }
0x11b0   :  { %1329 = vmatpush3.bf16.msra.mxu1 %v1326_v14 }
0x11b1   :  { %1331 = vmatprep.subr.bf16.mxu1 %v1330_v36 }
0x11b4   :  { %v1453_v61 = vpop.eup %1452  ;;  %1333 = vmatpush3.bf16.msra.mxu1 %v1330_v36 }
0x11b5   :  { %997 = vrot.lane.b32.xlu1 %v1453_v61, %s1546_s2  ;;  %v1455_v63 = vpop.eup %1454  ;;  %1335 = vmatprep.subr.bf16.mxu1 %v1334_v16 }
0x11b6   :  { %v988_v2 = vadd.f32 1.0, %v1455_v63 }
0x11b8   :  { %1456 = vrcp.f32 %v988_v2  ;;  %1337 = vmatpush3.bf16.msra.mxu1 %v1334_v16 }
0x11c2   :  { %v1457_v4 = vpop.eup %1456 }
0x11c3   :  { %v995_v26 = vmul.f32 %v1457_v4, %v926_v47 }
0x1227   :  { %v998_v27 = vpop.permute.xlu1 %997 }
0x1228   :  { %v1000_v1 = vmul.f32 %v1457_v4, %v998_v27 }
0x122a   :  { %1002 = vrot.lane.b32.xlu0 %v1000_v1, %s1546_s2 }
0x129c   :  { %v1003_v15 = vpop.permute.xlu0 %1002 }
0x129d   :  { %v1005_v0 = vadd.f32 %v1003_v15, %v995_v26 }
0x129f   :  { %1458 = vtanh.f32 %v1005_v0 }
0x12a0   :  { %1460 = vpow2.f32 %v1236_v8 }
0x12a9   :  { %v1459_v46 = vpop.eup %1458 }
0x12aa   :  { %1008 = vrot.lane.b32.xlu1 %v1459_v46, %s1546_s2  ;;  %v1461_v23 = vpop.eup %1460 }
0x12ab   :  { %v989_v18 = vadd.f32 1.0, %v1461_v23 }
0x12ad   :  { %1462 = vrcp.f32 %v989_v18 }
0x12b7   :  { %v1463_v9 = vpop.eup %1462 }
0x131c   :  { %v1009_v19 = vpop.permute.xlu1 %1008 }
0x131d   :  { %v1011_v20 = vmul.f32 %v1463_v9, %v1009_v19 }
0x131f   :  { %1012 = vst.msk [vmem:[#allocation3 + $0x38] sm:$0xff] %vm457_vm12, %v1011_v20 }
0x1320   :  { %1013 = vst.msk [vmem:[#allocation3] sm:$0xff] %vm459_vm13, %v1011_v20 }
0x1326   :  { %v1021_v3 = vld [vmem:[#allocation3 + $0x38] sm:$0xff] }
0x1327   :  { %v1014_v21 = vld [vmem:[#allocation3] sm:$0xff] }
0x1328   :  { %1278 = vmatprep.mubr.msk.f32.mxu1 %vm382_vm14, %v1014_v21 }
0x1329   :  { %1279 = vmatmul.mubr.msk.f32.vlgmr.msra.gmra.mrb[20].mxu1 %vm382_vm14, %v1015_v22 }
0x132a   :  { %1281 = vmatprep.mubr.msk.f32.mxu1 %vm382_vm14, %v1016_v24 }
0x132d   :  { %1282 = vmatmul.mubr.msk.f32.gmra.mrb[22].mxu1 %vm382_vm14, %v1017_v25 }
0x132e   :  { %1284 = vmatprep.mubr.msk.f32.mxu1 %vm382_vm14, %v1018_v28 }
0x1331   :  { %1285 = vmatmul.mubr.msk.f32.gmra.mrb[24].mxu1 %vm382_vm14, %v1019_v31 }
0x1332   :  { %1287 = vmatprep.mubr.msk.f32.mxu1 %vm382_vm14, %v1020_v32 }
0x1335   :  { %1288 = vmatmul.mubr.msk.f32.gmra.mrb[26].mxu1 %vm382_vm14, %v1021_v3 }
0x13fc   :  { %v1280_v34 = vpop.f32.mrb[20].mxu1 }
0x13fd   :  { %v1131_v35 = vadd.f32 %v1280_v34, %v1237_v33  ;;  %v1125_v37 = vpop.f32.mrb[21].mxu1 }
0x13fe   :  { %v1126_v38 = vadd.f32 %v1237_v33, %v1125_v37 }
0x13ff   :  { %1165 = vst [vmem:[#allocation9 + $0x8] sm:$0xff] %v1131_v35 }
0x1400   :  { %1164 = vst [vmem:[#allocation9] sm:$0xff] %v1126_v38  ;;  %v1283_v39 = vpop.f32.mrb[22].mxu1 }
0x1401   :  { %v1141_v41 = vadd.f32 %v1283_v39, %v1237_v33  ;;  %v1135_v43 = vpop.f32.mrb[23].mxu1 }
0x1402   :  { %v1136_v44 = vadd.f32 %v1237_v33, %v1135_v43 }
0x1403   :  { %1167 = vst [vmem:[#allocation9 + $0x18] sm:$0xff] %v1141_v41 }
0x1404   :  { %1166 = vst [vmem:[#allocation9 + $0x10] sm:$0xff] %v1136_v44  ;;  %v1286_v45 = vpop.f32.mrb[24].mxu1 }
0x1405   :  { %v1151_v10 = vadd.f32 %v1286_v45, %v1237_v33  ;;  %v1145_v17 = vpop.f32.mrb[25].mxu1 }
0x1406   :  { %v1146_v47 = vadd.f32 %v1237_v33, %v1145_v17 }
0x1407   :  { %1169 = vst [vmem:[#allocation9 + $0x28] sm:$0xff] %v1151_v10 }
0x1408   :  { %1168 = vst [vmem:[#allocation9 + $0x20] sm:$0xff] %v1146_v47  ;;  %v1289_v11 = vpop.f32.mrb[26].mxu1 }
0x1409   :  { %v1161_v48 = vadd.f32 %v1289_v11, %v1237_v33  ;;  %v1155_v49 = vpop.f32.mrb[27].mxu1 }
0x140a   :  { %v1156_v50 = vadd.f32 %v1237_v33, %v1155_v49 }
0x140b   :  { %1171 = vst [vmem:[#allocation9 + $0x38] sm:$0xff] %v1161_v48 }
0x140c   :  { %1170 = vst [vmem:[#allocation9 + $0x30] sm:$0xff] %v1156_v50 }
0x140d   :  { %1519 = shalt.err (!%p1516_p6)
}
0x140e   :  { %s1520_s27 = scalar_lea.hbm %s1922_s4, 1024 }
0x140f   :  { %p1521_p7 = scmp.ne.s32.totalorder %s1922_s4, %s1520_s27  ;;  %p1524_p8 = scmp.lt.u32.totalorder %s1520_s27, %s1922_s4 }
0x1411   :  { %p1526_p9 = pnand %p1524_p8, %p1521_p7 }
0x1413   :  { %1529 = shalt.err (!%p1526_p9)
}
0x1414   :  { %1183 = dma.vmem_to_hbm [thread:$0]  %s1178_s24, 1024, %s1922_s4, [#allocation6], %s1540_s1, %s1540_s1, %s1541_s13  }
0x1415   :  { %1534 = dma.done.wait [#allocation6], 1024  }
0x1416   :  { %1535 = vsyncadd [#allocation6], 4294966272 }
0x1417   :  { %1187 = vsyncpa [#allocation5], 1 }
0x1418   :  { %1188 = vsyncpa [#allocation8], 1 }
0x1419   :  { %1189 = vsyncpa [#allocation6], 1 }

</bundles_post_ra>
